<compile_context>
chip_gen: v6e
topology: v6e:2x2x1
jax: 0.10.0
libtpu: 0.0.40
codegen_flags: <defaults>
</compile_context>

<pallas_src>
import jax
import jax.numpy as jnp
import numpy as np
from jax.experimental import pallas as pl
from jax.experimental.pallas import tpu as pltpu

HEAD_SPECS = [
    ("landmarks", 136),
    ("pose", 3),
    ("attribute", 40),
    ("visibility", 29),
    ("age", 8),
    ("gender", 2),
    ("race", 5),
]
NUM_HEADS = len(HEAD_SPECS)
NUM_MASKS = 11
NUM_TOKENS = NUM_HEADS + NUM_MASKS          # 18
MPAD = 16                                    # mask dim padded 11 -> 16 (lane density)

_TOTAL_HEAD_DIM = sum(o for _, o in HEAD_SPECS)                 # 223
OPAD = ((_TOTAL_HEAD_DIM + 127) // 128) * 128                   # 256 (lane-dense)
_HEAD_OFFSETS = [0]
for _, _o in HEAD_SPECS:
    _HEAD_OFFSETS.append(_HEAD_OFFSETS[-1] + _o)

# Scoped-VMEM cap: above the 32 MiB default (bigger tiles on v5e/v6e), below
# v7x's 64 MiB physical per-TC budget.  Actual usage is small now that the
# attention is P-tiled and weights/activations are bf16.
_VMEM_LIMIT = 48 * 1024 * 1024


# ----------------------------- Pallas kernels -----------------------------

def _token_kernel(tok_ref, src_ref, pos_ref,
                  w1h_ref, b1h_ref, w2h_ref, b2h_ref, w3b_ref, b3b_ref,
                  hw1_ref, hb1_ref, hw2_ref, hb2_ref, hw3_ref, hb3_ref,
                  head_ref, hyper_ref,
                  m_sc, l_sc, acc_sc):
    # TODO(synk): the injected `transformer` nn.Module's architecture is not in
    # the provided code; modeled as a single token->image cross-attention block
    # with residual (keys = src + pos); the image embedding is returned unchanged.
    kv = pl.program_id(1)

    @pl.when(kv == 0)
    def _():
        m_sc[...] = jnp.full_like(m_sc, -jnp.inf)
        l_sc[...] = jnp.zeros_like(l_sc)
        acc_sc[...] = jnp.zeros_like(acc_sc)

    tok = tok_ref[...]                                    # (18, D) f32
    src = src_ref[...]                                    # (TPA, D) bf16
    k = src + pos_ref[...]                                # bf16
    scale = 1.0 / float(tok.shape[-1]) ** 0.5
    s = jnp.einsum("td,pd->tp", tok.astype(jnp.bfloat16), k,
                   preferred_element_type=jnp.float32) * scale   # (18, TPA) f32

    # online softmax across kv tiles (f32 state in VMEM scratch)
    m_prev = m_sc[...]
    m_new = jnp.maximum(m_prev, s.max(axis=-1, keepdims=True))
    alpha = jnp.exp(m_prev - m_new)
    p = jnp.exp(s - m_new)
    l_sc[...] = alpha * l_sc[...] + p.sum(axis=-1, keepdims=True)
    acc_sc[...] = alpha * acc_sc[...] + jnp.dot(
        p.astype(jnp.bfloat16), src, preferred_element_type=jnp.float32)
    m_sc[...] = m_new

    @pl.when(kv == pl.num_programs(1) - 1)
    def _():
        hs = tok + acc_sc[...] * (1.0 / l_sc[...])        # (18, D) f32
        hsb = hs.astype(jnp.bfloat16)

        # 7 prediction heads; layer-3 weights are packed into disjoint column
        # slices of one (D, OPAD) bf16 matrix per head so the result is a
        # single lane-dense 256-wide row.  Heads are independent; their
        # partials are tree-summed (no serialized accumulate chain).
        # TODO(synk): optionally pack L1/L2 block-diagonally into
        # (1, 7D)@(7D, 7D) bf16 dots to collapse the 21 M=1 MXU pushes into 3.
        parts = []
        for i in range(NUM_HEADS):
            h = hsb[i:i + 1, :]
            h = jnp.maximum(
                jnp.dot(h, w1h_ref[i], preferred_element_type=jnp.float32)
                + b1h_ref[i:i + 1, :], 0.0)
            h = jnp.maximum(
                jnp.dot(h.astype(jnp.bfloat16), w2h_ref[i],
                        preferred_element_type=jnp.float32)
                + b2h_ref[i:i + 1, :], 0.0)
            parts.append(jnp.dot(h.astype(jnp.bfloat16), w3b_ref[i],
                                 preferred_element_type=jnp.float32))
        while len(parts) > 1:
            nxt = [parts[j] + parts[j + 1] for j in range(0, len(parts) - 1, 2)]
            if len(parts) % 2:
                nxt.append(parts[-1])
            parts = nxt
        head_ref[...] = parts[0] + b3b_ref[...]

        # hyper-network MLP on the 11 mask tokens.
        m = hsb[NUM_HEADS:, :]                            # (11, D) bf16
        m = jnp.maximum(
            jnp.dot(m, hw1_ref[...], preferred_element_type=jnp.float32)
            + hb1_ref[...], 0.0)
        m = jnp.maximum(
            jnp.dot(m.astype(jnp.bfloat16), hw2_ref[...],
                    preferred_element_type=jnp.float32)
            + hb2_ref[...], 0.0)
        hyper_ref[...] = (
            jnp.dot(m.astype(jnp.bfloat16), hw3_ref[...],
                    preferred_element_type=jnp.float32)
            + hb3_ref[...])


def _upscale_seg_kernel(x_ref, w1_ref, b1_ref, mmean_ref, g_ref, beta_ref,
                        w2_ref, b2_ref, hyp_ref, seg_ref):
    # Everything stays in wide (lane-dense) layout; no mid-kernel reshapes.
    x = x_ref[...]                                                   # (TP, D) bf16

    # ConvTranspose2d(C, C/4, k=2, s=2): column (di*2+dj)*C4 + o.
    y1 = jnp.dot(x, w1_ref[...], preferred_element_type=jnp.float32) + b1_ref[...]

    # LayerNorm2d per sub-pixel group: mu and E[y^2] via two *independent*
    # pooling matmuls; var = E[y^2] - mu^2 breaks the mu -> var chain.
    y1b = y1.astype(jnp.bfloat16)
    mm = mmean_ref[...]
    mu = jnp.dot(y1b, mm, preferred_element_type=jnp.float32)
    ey2 = jnp.dot(y1b * y1b, mm, preferred_element_type=jnp.float32)
    var = jnp.maximum(ey2 - mu * mu, 0.0)
    y1 = (y1 - mu) * jax.lax.rsqrt(var + 1e-6) * g_ref[...] + beta_ref[...]
    # TODO(synk): switch to approximate (tanh/EUP) GELU if the VPU slot binds.
    y1 = jax.nn.gelu(y1, approximate=False)

    # ConvTranspose2d(C/4, C/8, k=2, s=2) as block-diagonal bf16 matmul,
    # column ((di*2+dj)*4 + dp*2+dq)*C8 + o.  Then GELU.
    y2 = jnp.dot(y1.astype(jnp.bfloat16), w2_ref[...],
                 preferred_element_type=jnp.float32) + b2_ref[...]
    y2 = jax.nn.gelu(y2, approximate=False)

    # seg = hyper_in @ upscaled, hyper expanded block-diagonally so the
    # contraction depth is 16*C8 and the output is 16*MPAD = 256 lanes wide.
    # TODO(synk): if the MXU binds on v5e, de-pad into 16 unrolled
    # (TP, C8)@(C8, MPAD) dots packed 8 groups per 128-lane store.
    seg_ref[...] = jnp.dot(y2.astype(jnp.bfloat16), hyp_ref[...],
                           preferred_element_type=jnp.float32)


# ------------------------------- wrappers ---------------------------------

def _choose_tile(p, cap):
    cap = max(8, min(cap, p))
    t = (cap // 8) * 8
    while t >= 8:
        if p % t == 0:
            return t
        t -= 8
    return p


def init_face_decoder_params(key, transformer_dim=32):
    D = transformer_dim
    ks = iter(jax.random.split(key, 64))

    def nrm(shape, scale=0.05):
        return scale * jax.random.normal(next(ks), shape, jnp.float32)

    def mlp_params(in_dim, hid, out):
        return dict(w1=nrm((in_dim, hid)), b1=nrm((1, hid)),
                    w2=nrm((hid, hid)), b2=nrm((1, hid)),
                    w3=nrm((hid, out)), b3=nrm((1, out)))

    return dict(
        tokens=nrm((NUM_TOKENS, D)),
        heads={name: mlp_params(D, D, out) for name, out in HEAD_SPECS},
        hyper_mlp=mlp_params(D, D, D // 8),
        # ConvTranspose2d weights stored flattened as (C_in, (di*2+dj)*C_out + o)
        ct1_w=nrm((D, 2, 2, D // 4)).reshape(D, 4 * (D // 4)),
        ct1_b=nrm((1, D // 4)),
        ln_g=1.0 + nrm((1, D // 4)),
        ln_b=nrm((1, D // 4)),
        ct2_w=nrm((D // 4, 2, 2, D // 8)).reshape(D // 4, 4 * (D // 8)),
        ct2_b=nrm((1, D // 8)),
    )


def face_decoder_forward(params, image_embeddings, image_pe):
    B, C, H, W = image_embeddings.shape
    D = C
    P = H * W
    C4, C8 = D // 4, D // 8
    bf16 = jnp.bfloat16
    TP = _choose_tile(P, 1024)                            # spatial tile (upscale)
    TPA = _choose_tile(P, max(8, min(2048, P // 2)))      # kv tile (attention)

    # bf16 image embedding / pe: halves HBM reads and VMEM tiles for both kernels
    src = image_embeddings.reshape(B, C, P).transpose(0, 2, 1).astype(bf16)   # (B,P,D)
    pos = image_pe.reshape(1, C, P).transpose(0, 2, 1).astype(bf16)           # (1,P,D)

    # ---- pack / stack token-path weights (tiny, trace-time); bf16 MXU operands
    w1h = jnp.stack([params["heads"][n]["w1"] for n, _ in HEAD_SPECS]).astype(bf16)
    b1h = jnp.stack([params["heads"][n]["b1"][0] for n, _ in HEAD_SPECS])
    w2h = jnp.stack([params["heads"][n]["w2"] for n, _ in HEAD_SPECS]).astype(bf16)
    b2h = jnp.stack([params["heads"][n]["b2"][0] for n, _ in HEAD_SPECS])
    w3_big = jnp.zeros((NUM_HEADS, D, OPAD), jnp.float32)
    b3_big = jnp.zeros((1, OPAD), jnp.float32)
    for i, (n, o) in enumerate(HEAD_SPECS):
        lo = _HEAD_OFFSETS[i]
        w3_big = w3_big.at[i, :, lo:lo + o].set(params["heads"][n]["w3"])
        b3_big = b3_big.at[0, lo:lo + o].set(params["heads"][n]["b3"][0])
    w3_big = w3_big.astype(bf16)
    hp = params["hyper_mlp"]

    # ---- fused token kernel: tiled online-softmax attention + 7 heads + hyper MLP
    head3d, hyper_in = pl.pallas_call(
        _token_kernel,
        grid=(B, P // TPA),
        in_specs=[
            pl.BlockSpec((NUM_TOKENS, D), lambda b, kv: (0, 0)),
            pl.BlockSpec((None, TPA, D), lambda b, kv: (b, kv, 0)),
            pl.BlockSpec((None, TPA, D), lambda b, kv: (0, kv, 0)),
            pl.BlockSpec((NUM_HEADS, D, D), lambda b, kv: (0, 0, 0)),
            pl.BlockSpec((NUM_HEADS, D), lambda b, kv: (0, 0)),
            pl.BlockSpec((NUM_HEADS, D, D), lambda b, kv: (0, 0, 0)),
            pl.BlockSpec((NUM_HEADS, D), lambda b, kv: (0, 0)),
            pl.BlockSpec((NUM_HEADS, D, OPAD), lambda b, kv: (0, 0, 0)),
            pl.BlockSpec((1, OPAD), lambda b, kv: (0, 0)),
            pl.BlockSpec((D, D), lambda b, kv: (0, 0)),
            pl.BlockSpec((1, D), lambda b, kv: (0, 0)),
            pl.BlockSpec((D, D), lambda b, kv: (0, 0)),
            pl.BlockSpec((1, D), lambda b, kv: (0, 0)),
            pl.BlockSpec((D, C8), lambda b, kv: (0, 0)),
            pl.BlockSpec((1, C8), lambda b, kv: (0, 0)),
        ],
        out_specs=(
            pl.BlockSpec((None, 1, OPAD), lambda b, kv: (b, 0, 0)),
            pl.BlockSpec((None, NUM_MASKS, C8), lambda b, kv: (b, 0, 0)),
        ),
        out_shape=(
            jax.ShapeDtypeStruct((B, 1, OPAD), jnp.float32),
            jax.ShapeDtypeStruct((B, NUM_MASKS, C8), jnp.float32),
        ),
        scratch_shapes=[
            pltpu.VMEM((NUM_TOKENS, 1), jnp.float32),     # running max
            pltpu.VMEM((NUM_TOKENS, 1), jnp.float32),     # running sum
            pltpu.VMEM((NUM_TOKENS, D), jnp.float32),     # running weighted value
        ],
        compiler_params=pltpu.CompilerParams(
            dimension_semantics=("parallel", "arbitrary"),
            vmem_limit_bytes=_VMEM_LIMIT),
    )(params["tokens"], src, pos, w1h, b1h, w2h, b2h, w3_big, b3_big,
      hp["w1"].astype(bf16), hp["b1"], hp["w2"].astype(bf16), hp["b2"],
      hp["w3"].astype(bf16), hp["b3"])

    head_cat = head3d[:, 0, :]                                          # (B, OPAD)
    head_out = {n: head_cat[:, _HEAD_OFFSETS[i]:_HEAD_OFFSETS[i] + o]
                for i, (n, o) in enumerate(HEAD_SPECS)}

    # ---- wide-layout upscale weights (tiny, trace-time); matmul operands bf16
    ct1_w = params["ct1_w"].astype(bf16)
    b1_wide = jnp.tile(params["ct1_b"], (1, 4))                         # (1, 4C4)
    g_wide = jnp.tile(params["ln_g"], (1, 4))
    beta_wide = jnp.tile(params["ln_b"], (1, 4))
    w2_bd = jnp.kron(jnp.eye(4, dtype=jnp.float32),
                     params["ct2_w"]).astype(bf16)                      # (4C4,16C8)
    b2_wide = jnp.tile(params["ct2_b"], (1, 16))                        # (1, 16C8)
    gidx = np.arange(4 * C4) // C4
    m_mean = jnp.asarray((gidx[:, None] == gidx[None, :]).astype(np.float32)
                         / C4).astype(bf16)

    # block-diagonal hyper weight: seg contraction depth 16*C8, output 16*MPAD.
    hyp_pad = jnp.pad(hyper_in, ((0, 0), (0, MPAD - NUM_MASKS), (0, 0)))
    hyp_t = hyp_pad.transpose(0, 2, 1)                                  # (B,C8,MPAD)
    eye16 = jnp.eye(16, dtype=jnp.float32)
    w_hyp = jnp.einsum("qr,bcm->bqcrm", eye16, hyp_t).reshape(
        B, 16 * C8, 16 * MPAD).astype(bf16)

    # ---- fused output_upscaling + seg kernel, grid over (batch, spatial) ----
    seg_wide = pl.pallas_call(
        _upscale_seg_kernel,
        grid=(B, P // TP),
        in_specs=[
            pl.BlockSpec((None, TP, D), lambda b, t: (b, t, 0)),
            pl.BlockSpec((D, 4 * C4), lambda b, t: (0, 0)),
            pl.BlockSpec((1, 4 * C4), lambda b, t: (0, 0)),
            pl.BlockSpec((4 * C4, 4 * C4), lambda b, t: (0, 0)),
            pl.BlockSpec((1, 4 * C4), lambda b, t: (0, 0)),
            pl.BlockSpec((1, 4 * C4), lambda b, t: (0, 0)),
            pl.BlockSpec((4 * C4, 16 * C8), lambda b, t: (0, 0)),
            pl.BlockSpec((1, 16 * C8), lambda b, t: (0, 0)),
            pl.BlockSpec((None, 16 * C8, 16 * MPAD), lambda b, t: (b, 0, 0)),
        ],
        out_specs=pl.BlockSpec((None, TP, 16 * MPAD), lambda b, t: (b, t, 0)),
        out_shape=jax.ShapeDtypeStruct((B, P, 16 * MPAD), jnp.float32),
        compiler_params=pltpu.CompilerParams(
            dimension_semantics=("parallel", "parallel"),
            vmem_limit_bytes=_VMEM_LIMIT),
    )(src, ct1_w, b1_wide, m_mean, g_wide, beta_wide, w2_bd, b2_wide, w_hyp)

    # un-pixel-shuffle: wide column ((di*2+dj)*4 + dp*2+dq)*MPAD + m
    #   -> output pixel (4i+2di+dp, 4j+2dj+dq), mask m.
    # Slice the MPAD padding BEFORE the transpose (moves 11/16 of the bytes).
    seg = seg_wide.reshape(B, H, W, 2, 2, 2, 2, MPAD)[..., :NUM_MASKS]
    seg = seg.transpose(0, 7, 1, 3, 5, 2, 4, 6).reshape(B, NUM_MASKS, 4 * H, 4 * W)

    return (head_out["landmarks"], head_out["pose"], head_out["attribute"],
            head_out["visibility"], head_out["age"], head_out["gender"],
            head_out["race"], seg)


# ----------------------- pure-JAX reference (check) ------------------------

def _ref_mlp3(x, p):
    h = jnp.maximum(x @ p["w1"] + p["b1"], 0.0)
    h = jnp.maximum(h @ p["w2"] + p["b2"], 0.0)
    return h @ p["w3"] + p["b3"]


def _ref_convT_2x2(x_nchw, w_flat, b, c_out):
    B, Cin, H, W = x_nchw.shape
    w = w_flat.reshape(Cin, 2, 2, c_out)                     # (Cin, di, dj, o)
    y = jnp.einsum("bchw,cpqo->bohpwq", x_nchw, w)           # (B, o, H, di, W, dj)
    return y.reshape(B, c_out, 2 * H, 2 * W) + b.reshape(1, c_out, 1, 1)


def face_decoder_reference(params, image_embeddings, image_pe):
    B, C, H, W = image_embeddings.shape
    D = C
    P = H * W
    tokens = jnp.broadcast_to(params["tokens"][None], (B, NUM_TOKENS, D))
    src = image_embeddings.reshape(B, C, P).transpose(0, 2, 1)
    pos = jnp.broadcast_to(image_pe, (B, C, H, W)).reshape(B, C, P).transpose(0, 2, 1)
    scores = jnp.einsum("btd,bsd->bts", tokens, src + pos) / float(D) ** 0.5
    hs = tokens + jnp.einsum("bts,bsd->btd", jax.nn.softmax(scores, -1), src)

    outs = [_ref_mlp3(hs[:, i, :], params["heads"][name])
            for i, (name, _) in enumerate(HEAD_SPECS)]
    hyper_in = _ref_mlp3(hs[:, NUM_HEADS:, :].reshape(B * NUM_MASKS, D),
                         params["hyper_mlp"]).reshape(B, NUM_MASKS, D // 8)

    x = src.transpose(0, 2, 1).reshape(B, C, H, W)
    y = _ref_convT_2x2(x, params["ct1_w"], params["ct1_b"][0], D // 4)
    mu = y.mean(axis=1, keepdims=True)
    var = ((y - mu) ** 2).mean(axis=1, keepdims=True)
    y = (y - mu) / jnp.sqrt(var + 1e-6)
    y = params["ln_g"][0].reshape(1, -1, 1, 1) * y + params["ln_b"][0].reshape(1, -1, 1, 1)
    y = jax.nn.gelu(y, approximate=False)
    y = _ref_convT_2x2(y, params["ct2_w"], params["ct2_b"][0], D // 8)
    y = jax.nn.gelu(y, approximate=False)
    b2, c2, h2, w2 = y.shape
    seg = (hyper_in @ y.reshape(b2, c2, h2 * w2)).reshape(B, -1, h2, w2)
    return outs + [seg]


# --------------------------------- main ------------------------------------

if __name__ == "__main__":
    B, D, H, W = 2, 32, 8, 8   # transformer_dim = 32 (small stand-in for 256)
    key = jax.random.PRNGKey(0)
    kp, ke, kpe = jax.random.split(key, 3)
    params = init_face_decoder_params(kp, transformer_dim=D)
    image_embeddings = jax.random.normal(ke, (B, D, H, W), jnp.float32)
    image_pe = jax.random.normal(kpe, (1, D, H, W), jnp.float32)

    outs = face_decoder_forward(params, image_embeddings, image_pe)
    outs = jax.block_until_ready(outs)

    refs = face_decoder_reference(params, image_embeddings, image_pe)
    expected = [(B, 136), (B, 3), (B, 40), (B, 29), (B, 8), (B, 2), (B, 5),
                (B, 11, 4 * H, 4 * W)]
    # bf16 MXU operands with f32 accumulation vs f32 reference.
    for o, r, s in zip(outs, refs, expected):
        assert o.shape == s, (o.shape, s)
        np.testing.assert_allclose(np.asarray(o), np.asarray(r),
                                   rtol=3e-3, atol=3e-3)
    print("KERNEL_OK")
</pallas_src>

<mosaic_0001>
module attributes {stable_mosaic.version = 11 : i64} {
  func.func @_token_kernel(%arg0: i32, %arg1: i32, %arg2: memref<18x32xf32, #tpu.memory_space<vmem>>, %arg3: memref<1x32x32xbf16, #tpu.memory_space<vmem>>, %arg4: memref<1x32x32xbf16, #tpu.memory_space<vmem>>, %arg5: memref<7x32x32xbf16, #tpu.memory_space<vmem>>, %arg6: memref<7x32xf32, #tpu.memory_space<vmem>>, %arg7: memref<7x32x32xbf16, #tpu.memory_space<vmem>>, %arg8: memref<7x32xf32, #tpu.memory_space<vmem>>, %arg9: memref<7x32x256xbf16, #tpu.memory_space<vmem>>, %arg10: memref<1x256xf32, #tpu.memory_space<vmem>>, %arg11: memref<32x32xbf16, #tpu.memory_space<vmem>>, %arg12: memref<1x32xf32, #tpu.memory_space<vmem>>, %arg13: memref<32x32xbf16, #tpu.memory_space<vmem>>, %arg14: memref<1x32xf32, #tpu.memory_space<vmem>>, %arg15: memref<32x4xbf16, #tpu.memory_space<vmem>>, %arg16: memref<1x4xf32, #tpu.memory_space<vmem>>, %arg17: memref<1x1x256xf32, #tpu.memory_space<vmem>>, %arg18: memref<1x11x4xf32, #tpu.memory_space<vmem>>, %arg19: memref<18x1xf32, #tpu.memory_space<vmem>>, %arg20: memref<18x1xf32, #tpu.memory_space<vmem>>, %arg21: memref<18x32xf32, #tpu.memory_space<vmem>>) attributes {dimension_semantics = [#tpu.dimension_semantics<parallel>, #tpu.dimension_semantics<arbitrary>], iteration_bounds = array<i64: 2, 2>, scalar_prefetch = 0 : i64, scratch_operands = 3 : i64, tpu.core_type = #tpu.core_type<tc>, window_params = [{pipeline_mode = #tpu.pipeline_mode<synchronous>, transform_indices = @transform_0, window_bounds = array<i64: 18, 32>}, {transform_indices = @transform_1, window_bounds = array<i64: 1, 32, 32>}, {transform_indices = @transform_2, window_bounds = array<i64: 1, 32, 32>}, {pipeline_mode = #tpu.pipeline_mode<synchronous>, transform_indices = @transform_3, window_bounds = array<i64: 7, 32, 32>}, {pipeline_mode = #tpu.pipeline_mode<synchronous>, transform_indices = @transform_4, window_bounds = array<i64: 7, 32>}, {pipeline_mode = #tpu.pipeline_mode<synchronous>, transform_indices = @transform_5, window_bounds = array<i64: 7, 32, 32>}, {pipeline_mode = #tpu.pipeline_mode<synchronous>, transform_indices = @transform_6, window_bounds = array<i64: 7, 32>}, {pipeline_mode = #tpu.pipeline_mode<synchronous>, transform_indices = @transform_7, window_bounds = array<i64: 7, 32, 256>}, {pipeline_mode = #tpu.pipeline_mode<synchronous>, transform_indices = @transform_8, window_bounds = array<i64: 1, 256>}, {pipeline_mode = #tpu.pipeline_mode<synchronous>, transform_indices = @transform_9, window_bounds = array<i64: 32, 32>}, {pipeline_mode = #tpu.pipeline_mode<synchronous>, transform_indices = @transform_10, window_bounds = array<i64: 1, 32>}, {pipeline_mode = #tpu.pipeline_mode<synchronous>, transform_indices = @transform_11, window_bounds = array<i64: 32, 32>}, {pipeline_mode = #tpu.pipeline_mode<synchronous>, transform_indices = @transform_12, window_bounds = array<i64: 1, 32>}, {pipeline_mode = #tpu.pipeline_mode<synchronous>, transform_indices = @transform_13, window_bounds = array<i64: 32, 4>}, {pipeline_mode = #tpu.pipeline_mode<synchronous>, transform_indices = @transform_14, window_bounds = array<i64: 1, 4>}, {transform_indices = @transform_15, window_bounds = array<i64: 1, 1, 256>}, {transform_indices = @transform_16, window_bounds = array<i64: 1, 11, 4>}]} {
    %c0_i32 = arith.constant 0 : i32
    %0 = arith.cmpi eq, %arg1, %c0_i32 : i32
    %1 = arith.extui %0 : i1 to i32
    %c0_i32_0 = arith.constant 0 : i32
    %2 = arith.cmpi ne, %1, %c0_i32_0 : i32
    scf.if %2 {
      %cst_25 = arith.constant 0xFF800000 : f32
      %39 = vector.broadcast %cst_25 : f32 to vector<18x1xf32>
      %c0_26 = arith.constant 0 : index
      %c0_27 = arith.constant 0 : index
      %40 = vector.load %arg19[%c0_26, %c0_27] : memref<18x1xf32, #tpu.memory_space<vmem>>, vector<18x1xf32>
      tpu.vector_store %arg19[%c0_26, %c0_27], %39 {strides = array<i32>} : memref<18x1xf32, #tpu.memory_space<vmem>>, vector<18x1xf32>,
      %cst_28 = arith.constant 0.000000e+00 : f32
      %41 = vector.broadcast %cst_28 : f32 to vector<18x1xf32>
      %c0_29 = arith.constant 0 : index
      %c0_30 = arith.constant 0 : index
      %42 = vector.load %arg20[%c0_29, %c0_30] : memref<18x1xf32, #tpu.memory_space<vmem>>, vector<18x1xf32>
      tpu.vector_store %arg20[%c0_29, %c0_30], %41 {strides = array<i32>} : memref<18x1xf32, #tpu.memory_space<vmem>>, vector<18x1xf32>,
      %cst_31 = arith.constant 0.000000e+00 : f32
      %43 = vector.broadcast %cst_31 : f32 to vector<18x32xf32>
      %c0_32 = arith.constant 0 : index
      %c0_33 = arith.constant 0 : index
      %44 = vector.load %arg21[%c0_32, %c0_33] : memref<18x32xf32, #tpu.memory_space<vmem>>, vector<18x32xf32>
      tpu.vector_store %arg21[%c0_32, %c0_33], %43 {strides = array<i32>} : memref<18x32xf32, #tpu.memory_space<vmem>>, vector<18x32xf32>,
    } else {
    }
    %c0 = arith.constant 0 : index
    %c0_1 = arith.constant 0 : index
    %3 = vector.load %arg2[%c0, %c0_1] : memref<18x32xf32, #tpu.memory_space<vmem>>, vector<18x32xf32>
    %c0_2 = arith.constant 0 : index
    %c0_3 = arith.constant 0 : index
    %c0_4 = arith.constant 0 : index
    %4 = vector.load %arg3[%c0_2, %c0_3, %c0_4] : memref<1x32x32xbf16, #tpu.memory_space<vmem>>, vector<1x32x32xbf16>
    %5 = vector.shape_cast %4 : vector<1x32x32xbf16> to vector<32x32xbf16>
    %c0_5 = arith.constant 0 : index
    %c0_6 = arith.constant 0 : index
    %c0_7 = arith.constant 0 : index
    %6 = vector.load %arg4[%c0_5, %c0_6, %c0_7] : memref<1x32x32xbf16, #tpu.memory_space<vmem>>, vector<1x32x32xbf16>
    %7 = vector.shape_cast %6 : vector<1x32x32xbf16> to vector<32x32xbf16>
    %8 = arith.addf %5, %7 : vector<32x32xbf16>
    %9 = arith.truncf %3 : vector<18x32xf32> to vector<18x32xbf16>
    "tpu.trace_start"() <{level = 10 : i32, message = "td,pd->tp"}> : () -> ()
    %cst = arith.constant dense<0.000000e+00> : vector<18x32xf32>
    %10 = tpu.matmul %9, %8, %cst {dimension_numbers = #tpu.dot_dimension_numbers<[1], [1], [0], [0], [0, 0, 1, 0], [], []>} : vector<18x32xbf16>, vector<32x32xbf16>, vector<18x32xf32> -> vector<18x32xf32>
    "tpu.trace_stop"() : () -> ()
    %cst_8 = arith.constant 0.176776692 : f32
    %11 = vector.broadcast %cst_8 : f32 to vector<18x32xf32>
    %12 = arith.mulf %10, %11 : vector<18x32xf32>
    %c0_9 = arith.constant 0 : index
    %c0_10 = arith.constant 0 : index
    %13 = vector.load %arg19[%c0_9, %c0_10] : memref<18x1xf32, #tpu.memory_space<vmem>>, vector<18x1xf32>
    %cst_11 = arith.constant dense<0xFF800000> : vector<18xf32>
    %14 = vector.multi_reduction <maximumf>, %12, %cst_11 [1] : vector<18x32xf32> to vector<18xf32>
    %15 = vector.shape_cast %14 : vector<18xf32> to vector<18x1xf32>
    %16 = arith.maximumf %13, %15 : vector<18x1xf32>
    %17 = arith.subf %13, %16 : vector<18x1xf32>
    %18 = math.exp %17 : vector<18x1xf32>
    %19 = vector.broadcast %16 : vector<18x1xf32> to vector<18x32xf32>
    %20 = arith.subf %12, %19 : vector<18x32xf32>
    %21 = math.exp %20 : vector<18x32xf32>
    %c0_12 = arith.constant 0 : index
    %c0_13 = arith.constant 0 : index
    %22 = vector.load %arg20[%c0_12, %c0_13] : memref<18x1xf32, #tpu.memory_space<vmem>>, vector<18x1xf32>
    %23 = arith.mulf %18, %22 : vector<18x1xf32>
    %cst_14 = arith.constant dense<0.000000e+00> : vector<18xf32>
    %24 = vector.multi_reduction <add>, %21, %cst_14 [1] : vector<18x32xf32> to vector<18xf32>
    %25 = vector.shape_cast %24 : vector<18xf32> to vector<18x1xf32>
    %26 = arith.addf %23, %25 : vector<18x1xf32>
    %c0_15 = arith.constant 0 : index
    %c0_16 = arith.constant 0 : index
    %27 = vector.load %arg20[%c0_15, %c0_16] : memref<18x1xf32, #tpu.memory_space<vmem>>, vector<18x1xf32>
    tpu.vector_store %arg20[%c0_15, %c0_16], %26 {strides = array<i32>} : memref<18x1xf32, #tpu.memory_space<vmem>>, vector<18x1xf32>,
    %c0_17 = arith.constant 0 : index
    %c0_18 = arith.constant 0 : index
    %28 = vector.load %arg21[%c0_17, %c0_18] : memref<18x32xf32, #tpu.memory_space<vmem>>, vector<18x32xf32>
    %29 = vector.broadcast %18 : vector<18x1xf32> to vector<18x32xf32>
    %30 = arith.mulf %29, %28 : vector<18x32xf32>
    %31 = arith.truncf %21 : vector<18x32xf32> to vector<18x32xbf16>
    %cst_19 = arith.constant dense<0.000000e+00> : vector<18x32xf32>
    %32 = tpu.matmul %31, %5, %cst_19 {dimension_numbers = #tpu.dot_dimension_numbers<[1], [0], [0], [1], [0, 0, 1, 1], [], []>} : vector<18x32xbf16>, vector<32x32xbf16>, vector<18x32xf32> -> vector<18x32xf32>
    %33 = arith.addf %30, %32 : vector<18x32xf32>
    %c0_20 = arith.constant 0 : index
    %c0_21 = arith.constant 0 : index
    %34 = vector.load %arg21[%c0_20, %c0_21] : memref<18x32xf32, #tpu.memory_space<vmem>>, vector<18x32xf32>
    tpu.vector_store %arg21[%c0_20, %c0_21], %33 {strides = array<i32>} : memref<18x32xf32, #tpu.memory_space<vmem>>, vector<18x32xf32>,
    %c0_22 = arith.constant 0 : index
    %c0_23 = arith.constant 0 : index
    %35 = vector.load %arg19[%c0_22, %c0_23] : memref<18x1xf32, #tpu.memory_space<vmem>>, vector<18x1xf32>
    tpu.vector_store %arg19[%c0_22, %c0_23], %16 {strides = array<i32>} : memref<18x1xf32, #tpu.memory_space<vmem>>, vector<18x1xf32>,
    %c1_i32 = arith.constant 1 : i32
    %36 = arith.cmpi eq, %arg1, %c1_i32 : i32
    %37 = arith.extui %36 : i1 to i32
    %c0_i32_24 = arith.constant 0 : i32
    %38 = arith.cmpi ne, %37, %c0_i32_24 : i32
    scf.if %38 {
      %c0_25 = arith.constant 0 : index
      %c0_26 = arith.constant 0 : index
      %39 = vector.load %arg21[%c0_25, %c0_26] : memref<18x32xf32, #tpu.memory_space<vmem>>, vector<18x32xf32>
      %c0_27 = arith.constant 0 : index
      %c0_28 = arith.constant 0 : index
      %40 = vector.load %arg20[%c0_27, %c0_28] : memref<18x1xf32, #tpu.memory_space<vmem>>, vector<18x1xf32>
      %cst_29 = arith.constant 1.000000e+00 : f32
      %41 = vector.broadcast %cst_29 : f32 to vector<18x1xf32>
      %42 = arith.divf %41, %40 : vector<18x1xf32>
      %43 = vector.broadcast %42 : vector<18x1xf32> to vector<18x32xf32>
      %44 = arith.mulf %39, %43 : vector<18x32xf32>
      %45 = arith.addf %3, %44 : vector<18x32xf32>
      %46 = arith.truncf %45 : vector<18x32xf32> to vector<18x32xbf16>
      %47 = vector.extract_strided_slice %46 {offsets = [0, 0], sizes = [1, 32], strides = [1, 1]} : vector<18x32xbf16> to vector<1x32xbf16>
      %c0_30 = arith.constant 0 : index
      %c0_31 = arith.constant 0 : index
      %c0_32 = arith.constant 0 : index
      %48 = vector.load %arg5[%c0_30, %c0_31, %c0_32] : memref<7x32x32xbf16, #tpu.memory_space<vmem>>, vector<1x32x32xbf16>
      %49 = vector.shape_cast %48 : vector<1x32x32xbf16> to vector<32x32xbf16>
      %cst_33 = arith.constant dense<0.000000e+00> : vector<1x32xf32>
      %50 = tpu.matmul %47, %49, %cst_33 {dimension_numbers = #tpu.dot_dimension_numbers<[1], [0], [0], [1], [0, 0, 1, 1], [], []>} : vector<1x32xbf16>, vector<32x32xbf16>, vector<1x32xf32> -> vector<1x32xf32>
      %c0_34 = arith.constant 0 : index
      %c0_35 = arith.constant 0 : index
      %51 = vector.load %arg6[%c0_34, %c0_35] : memref<7x32xf32, #tpu.memory_space<vmem>>, vector<1x32xf32>
      %52 = arith.addf %50, %51 : vector<1x32xf32>
      %cst_36 = arith.constant 0.000000e+00 : f32
      %53 = vector.broadcast %cst_36 : f32 to vector<1x32xf32>
      %54 = arith.maximumf %52, %53 : vector<1x32xf32>
      %55 = arith.truncf %54 : vector<1x32xf32> to vector<1x32xbf16>
      %c0_37 = arith.constant 0 : index
      %c0_38 = arith.constant 0 : index
      %c0_39 = arith.constant 0 : index
      %56 = vector.load %arg7[%c0_37, %c0_38, %c0_39] : memref<7x32x32xbf16, #tpu.memory_space<vmem>>, vector<1x32x32xbf16>
      %57 = vector.shape_cast %56 : vector<1x32x32xbf16> to vector<32x32xbf16>
      %cst_40 = arith.constant dense<0.000000e+00> : vector<1x32xf32>
      %58 = tpu.matmul %55, %57, %cst_40 {dimension_numbers = #tpu.dot_dimension_numbers<[1], [0], [0], [1], [0, 0, 1, 1], [], []>} : vector<1x32xbf16>, vector<32x32xbf16>, vector<1x32xf32> -> vector<1x32xf32>
      %c0_41 = arith.constant 0 : index
      %c0_42 = arith.constant 0 : index
      %59 = vector.load %arg8[%c0_41, %c0_42] : memref<7x32xf32, #tpu.memory_space<vmem>>, vector<1x32xf32>
      %60 = arith.addf %58, %59 : vector<1x32xf32>
      %cst_43 = arith.constant 0.000000e+00 : f32
      %61 = vector.broadcast %cst_43 : f32 to vector<1x32xf32>
      %62 = arith.maximumf %60, %61 : vector<1x32xf32>
      %63 = arith.truncf %62 : vector<1x32xf32> to vector<1x32xbf16>
      %c0_44 = arith.constant 0 : index
      %c0_45 = arith.constant 0 : index
      %c0_46 = arith.constant 0 : index
      %64 = vector.load %arg9[%c0_44, %c0_45, %c0_46] : memref<7x32x256xbf16, #tpu.memory_space<vmem>>, vector<1x32x256xbf16>
      %65 = vector.shape_cast %64 : vector<1x32x256xbf16> to vector<32x256xbf16>
      %cst_47 = arith.constant dense<0.000000e+00> : vector<1x256xf32>
      %66 = tpu.matmul %63, %65, %cst_47 {dimension_numbers = #tpu.dot_dimension_numbers<[1], [0], [0], [1], [0, 0, 1, 1], [], []>} : vector<1x32xbf16>, vector<32x256xbf16>, vector<1x256xf32> -> vector<1x256xf32>
      %67 = vector.extract_strided_slice %46 {offsets = [1, 0], sizes = [1, 32], strides = [1, 1]} : vector<18x32xbf16> to vector<1x32xbf16>
      %c1 = arith.constant 1 : index
      %c0_48 = arith.constant 0 : index
      %c0_49 = arith.constant 0 : index
      %68 = vector.load %arg5[%c1, %c0_48, %c0_49] : memref<7x32x32xbf16, #tpu.memory_space<vmem>>, vector<1x32x32xbf16>
      %69 = vector.shape_cast %68 : vector<1x32x32xbf16> to vector<32x32xbf16>
      %cst_50 = arith.constant dense<0.000000e+00> : vector<1x32xf32>
      %70 = tpu.matmul %67, %69, %cst_50 {dimension_numbers = #tpu.dot_dimension_numbers<[1], [0], [0], [1], [0, 0, 1, 1], [], []>} : vector<1x32xbf16>, vector<32x32xbf16>, vector<1x32xf32> -> vector<1x32xf32>
      %c1_51 = arith.constant 1 : index
      %c0_52 = arith.constant 0 : index
      %71 = vector.load %arg6[%c1_51, %c0_52] : memref<7x32xf32, #tpu.memory_space<vmem>>, vector<1x32xf32>
      %72 = arith.addf %70, %71 : vector<1x32xf32>
      %cst_53 = arith.constant 0.000000e+00 : f32
      %73 = vector.broadcast %cst_53 : f32 to vector<1x32xf32>
      %74 = arith.maximumf %72, %73 : vector<1x32xf32>
      %75 = arith.truncf %74 : vector<1x32xf32> to vector<1x32xbf16>
      %c1_54 = arith.constant 1 : index
      %c0_55 = arith.constant 0 : index
      %c0_56 = arith.constant 0 : index
      %76 = vector.load %arg7[%c1_54, %c0_55, %c0_56] : memref<7x32x32xbf16, #tpu.memory_space<vmem>>, vector<1x32x32xbf16>
      %77 = vector.shape_cast %76 : vector<1x32x32xbf16> to vector<32x32xbf16>
      %cst_57 = arith.constant dense<0.000000e+00> : vector<1x32xf32>
      %78 = tpu.matmul %75, %77, %cst_57 {dimension_numbers = #tpu.dot_dimension_numbers<[1], [0], [0], [1], [0, 0, 1, 1], [], []>} : vector<1x32xbf16>, vector<32x32xbf16>, vector<1x32xf32> -> vector<1x32xf32>
      %c1_58 = arith.constant 1 : index
      %c0_59 = arith.constant 0 : index
      %79 = vector.load %arg8[%c1_58, %c0_59] : memref<7x32xf32, #tpu.memory_space<vmem>>, vector<1x32xf32>
      %80 = arith.addf %78, %79 : vector<1x32xf32>
      %cst_60 = arith.constant 0.000000e+00 : f32
      %81 = vector.broadcast %cst_60 : f32 to vector<1x32xf32>
      %82 = arith.maximumf %80, %81 : vector<1x32xf32>
      %83 = arith.truncf %82 : vector<1x32xf32> to vector<1x32xbf16>
      %c1_61 = arith.constant 1 : index
      %c0_62 = arith.constant 0 : index
      %c0_63 = arith.constant 0 : index
      %84 = vector.load %arg9[%c1_61, %c0_62, %c0_63] : memref<7x32x256xbf16, #tpu.memory_space<vmem>>, vector<1x32x256xbf16>
      %85 = vector.shape_cast %84 : vector<1x32x256xbf16> to vector<32x256xbf16>
      %cst_64 = arith.constant dense<0.000000e+00> : vector<1x256xf32>
      %86 = tpu.matmul %83, %85, %cst_64 {dimension_numbers = #tpu.dot_dimension_numbers<[1], [0], [0], [1], [0, 0, 1, 1], [], []>} : vector<1x32xbf16>, vector<32x256xbf16>, vector<1x256xf32> -> vector<1x256xf32>
      %87 = vector.extract_strided_slice %46 {offsets = [2, 0], sizes = [1, 32], strides = [1, 1]} : vector<18x32xbf16> to vector<1x32xbf16>
      %c2 = arith.constant 2 : index
      %c0_65 = arith.constant 0 : index
      %c0_66 = arith.constant 0 : index
      %88 = vector.load %arg5[%c2, %c0_65, %c0_66] : memref<7x32x32xbf16, #tpu.memory_space<vmem>>, vector<1x32x32xbf16>
      %89 = vector.shape_cast %88 : vector<1x32x32xbf16> to vector<32x32xbf16>
      %cst_67 = arith.constant dense<0.000000e+00> : vector<1x32xf32>
      %90 = tpu.matmul %87, %89, %cst_67 {dimension_numbers = #tpu.dot_dimension_numbers<[1], [0], [0], [1], [0, 0, 1, 1], [], []>} : vector<1x32xbf16>, vector<32x32xbf16>, vector<1x32xf32> -> vector<1x32xf32>
      %c2_68 = arith.constant 2 : index
      %c0_69 = arith.constant 0 : index
      %91 = vector.load %arg6[%c2_68, %c0_69] : memref<7x32xf32, #tpu.memory_space<vmem>>, vector<1x32xf32>
      %92 = arith.addf %90, %91 : vector<1x32xf32>
      %cst_70 = arith.constant 0.000000e+00 : f32
      %93 = vector.broadcast %cst_70 : f32 to vector<1x32xf32>
      %94 = arith.maximumf %92, %93 : vector<1x32xf32>
      %95 = arith.truncf %94 : vector<1x32xf32> to vector<1x32xbf16>
      %c2_71 = arith.constant 2 : index
      %c0_72 = arith.constant 0 : index
      %c0_73 = arith.constant 0 : index
      %96 = vector.load %arg7[%c2_71, %c0_72, %c0_73] : memref<7x32x32xbf16, #tpu.memory_space<vmem>>, vector<1x32x32xbf16>
      %97 = vector.shape_cast %96 : vector<1x32x32xbf16> to vector<32x32xbf16>
      %cst_74 = arith.constant dense<0.000000e+00> : vector<1x32xf32>
      %98 = tpu.matmul %95, %97, %cst_74 {dimension_numbers = #tpu.dot_dimension_numbers<[1], [0], [0], [1], [0, 0, 1, 1], [], []>} : vector<1x32xbf16>, vector<32x32xbf16>, vector<1x32xf32> -> vector<1x32xf32>
      %c2_75 = arith.constant 2 : index
      %c0_76 = arith.constant 0 : index
      %99 = vector.load %arg8[%c2_75, %c0_76] : memref<7x32xf32, #tpu.memory_space<vmem>>, vector<1x32xf32>
      %100 = arith.addf %98, %99 : vector<1x32xf32>
      %cst_77 = arith.constant 0.000000e+00 : f32
      %101 = vector.broadcast %cst_77 : f32 to vector<1x32xf32>
      %102 = arith.maximumf %100, %101 : vector<1x32xf32>
      %103 = arith.truncf %102 : vector<1x32xf32> to vector<1x32xbf16>
      %c2_78 = arith.constant 2 : index
      %c0_79 = arith.constant 0 : index
      %c0_80 = arith.constant 0 : index
      %104 = vector.load %arg9[%c2_78, %c0_79, %c0_80] : memref<7x32x256xbf16, #tpu.memory_space<vmem>>, vector<1x32x256xbf16>
      %105 = vector.shape_cast %104 : vector<1x32x256xbf16> to vector<32x256xbf16>
      %cst_81 = arith.constant dense<0.000000e+00> : vector<1x256xf32>
      %106 = tpu.matmul %103, %105, %cst_81 {dimension_numbers = #tpu.dot_dimension_numbers<[1], [0], [0], [1], [0, 0, 1, 1], [], []>} : vector<1x32xbf16>, vector<32x256xbf16>, vector<1x256xf32> -> vector<1x256xf32>
      %107 = vector.extract_strided_slice %46 {offsets = [3, 0], sizes = [1, 32], strides = [1, 1]} : vector<18x32xbf16> to vector<1x32xbf16>
      %c3 = arith.constant 3 : index
      %c0_82 = arith.constant 0 : index
      %c0_83 = arith.constant 0 : index
      %108 = vector.load %arg5[%c3, %c0_82, %c0_83] : memref<7x32x32xbf16, #tpu.memory_space<vmem>>, vector<1x32x32xbf16>
      %109 = vector.shape_cast %108 : vector<1x32x32xbf16> to vector<32x32xbf16>
      %cst_84 = arith.constant dense<0.000000e+00> : vector<1x32xf32>
      %110 = tpu.matmul %107, %109, %cst_84 {dimension_numbers = #tpu.dot_dimension_numbers<[1], [0], [0], [1], [0, 0, 1, 1], [], []>} : vector<1x32xbf16>, vector<32x32xbf16>, vector<1x32xf32> -> vector<1x32xf32>
      %c3_85 = arith.constant 3 : index
      %c0_86 = arith.constant 0 : index
      %111 = vector.load %arg6[%c3_85, %c0_86] : memref<7x32xf32, #tpu.memory_space<vmem>>, vector<1x32xf32>
      %112 = arith.addf %110, %111 : vector<1x32xf32>
      %cst_87 = arith.constant 0.000000e+00 : f32
      %113 = vector.broadcast %cst_87 : f32 to vector<1x32xf32>
      %114 = arith.maximumf %112, %113 : vector<1x32xf32>
      %115 = arith.truncf %114 : vector<1x32xf32> to vector<1x32xbf16>
      %c3_88 = arith.constant 3 : index
      %c0_89 = arith.constant 0 : index
      %c0_90 = arith.constant 0 : index
      %116 = vector.load %arg7[%c3_88, %c0_89, %c0_90] : memref<7x32x32xbf16, #tpu.memory_space<vmem>>, vector<1x32x32xbf16>
      %117 = vector.shape_cast %116 : vector<1x32x32xbf16> to vector<32x32xbf16>
      %cst_91 = arith.constant dense<0.000000e+00> : vector<1x32xf32>
      %118 = tpu.matmul %115, %117, %cst_91 {dimension_numbers = #tpu.dot_dimension_numbers<[1], [0], [0], [1], [0, 0, 1, 1], [], []>} : vector<1x32xbf16>, vector<32x32xbf16>, vector<1x32xf32> -> vector<1x32xf32>
      %c3_92 = arith.constant 3 : index
      %c0_93 = arith.constant 0 : index
      %119 = vector.load %arg8[%c3_92, %c0_93] : memref<7x32xf32, #tpu.memory_space<vmem>>, vector<1x32xf32>
      %120 = arith.addf %118, %119 : vector<1x32xf32>
      %cst_94 = arith.constant 0.000000e+00 : f32
      %121 = vector.broadcast %cst_94 : f32 to vector<1x32xf32>
      %122 = arith.maximumf %120, %121 : vector<1x32xf32>
      %123 = arith.truncf %122 : vector<1x32xf32> to vector<1x32xbf16>
      %c3_95 = arith.constant 3 : index
      %c0_96 = arith.constant 0 : index
      %c0_97 = arith.constant 0 : index
      %124 = vector.load %arg9[%c3_95, %c0_96, %c0_97] : memref<7x32x256xbf16, #tpu.memory_space<vmem>>, vector<1x32x256xbf16>
      %125 = vector.shape_cast %124 : vector<1x32x256xbf16> to vector<32x256xbf16>
      %cst_98 = arith.constant dense<0.000000e+00> : vector<1x256xf32>
      %126 = tpu.matmul %123, %125, %cst_98 {dimension_numbers = #tpu.dot_dimension_numbers<[1], [0], [0], [1], [0, 0, 1, 1], [], []>} : vector<1x32xbf16>, vector<32x256xbf16>, vector<1x256xf32> -> vector<1x256xf32>
      %127 = vector.extract_strided_slice %46 {offsets = [4, 0], sizes = [1, 32], strides = [1, 1]} : vector<18x32xbf16> to vector<1x32xbf16>
      %c4 = arith.constant 4 : index
      %c0_99 = arith.constant 0 : index
      %c0_100 = arith.constant 0 : index
      %128 = vector.load %arg5[%c4, %c0_99, %c0_100] : memref<7x32x32xbf16, #tpu.memory_space<vmem>>, vector<1x32x32xbf16>
      %129 = vector.shape_cast %128 : vector<1x32x32xbf16> to vector<32x32xbf16>
      %cst_101 = arith.constant dense<0.000000e+00> : vector<1x32xf32>
      %130 = tpu.matmul %127, %129, %cst_101 {dimension_numbers = #tpu.dot_dimension_numbers<[1], [0], [0], [1], [0, 0, 1, 1], [], []>} : vector<1x32xbf16>, vector<32x32xbf16>, vector<1x32xf32> -> vector<1x32xf32>
      %c4_102 = arith.constant 4 : index
      %c0_103 = arith.constant 0 : index
      %131 = vector.load %arg6[%c4_102, %c0_103] : memref<7x32xf32, #tpu.memory_space<vmem>>, vector<1x32xf32>
      %132 = arith.addf %130, %131 : vector<1x32xf32>
      %cst_104 = arith.constant 0.000000e+00 : f32
      %133 = vector.broadcast %cst_104 : f32 to vector<1x32xf32>
      %134 = arith.maximumf %132, %133 : vector<1x32xf32>
      %135 = arith.truncf %134 : vector<1x32xf32> to vector<1x32xbf16>
      %c4_105 = arith.constant 4 : index
      %c0_106 = arith.constant 0 : index
      %c0_107 = arith.constant 0 : index
      %136 = vector.load %arg7[%c4_105, %c0_106, %c0_107] : memref<7x32x32xbf16, #tpu.memory_space<vmem>>, vector<1x32x32xbf16>
      %137 = vector.shape_cast %136 : vector<1x32x32xbf16> to vector<32x32xbf16>
      %cst_108 = arith.constant dense<0.000000e+00> : vector<1x32xf32>
      %138 = tpu.matmul %135, %137, %cst_108 {dimension_numbers = #tpu.dot_dimension_numbers<[1], [0], [0], [1], [0, 0, 1, 1], [], []>} : vector<1x32xbf16>, vector<32x32xbf16>, vector<1x32xf32> -> vector<1x32xf32>
      %c4_109 = arith.constant 4 : index
      %c0_110 = arith.constant 0 : index
      %139 = vector.load %arg8[%c4_109, %c0_110] : memref<7x32xf32, #tpu.memory_space<vmem>>, vector<1x32xf32>
      %140 = arith.addf %138, %139 : vector<1x32xf32>
      %cst_111 = arith.constant 0.000000e+00 : f32
      %141 = vector.broadcast %cst_111 : f32 to vector<1x32xf32>
      %142 = arith.maximumf %140, %141 : vector<1x32xf32>
      %143 = arith.truncf %142 : vector<1x32xf32> to vector<1x32xbf16>
      %c4_112 = arith.constant 4 : index
      %c0_113 = arith.constant 0 : index
      %c0_114 = arith.constant 0 : index
      %144 = vector.load %arg9[%c4_112, %c0_113, %c0_114] : memref<7x32x256xbf16, #tpu.memory_space<vmem>>, vector<1x32x256xbf16>
      %145 = vector.shape_cast %144 : vector<1x32x256xbf16> to vector<32x256xbf16>
      %cst_115 = arith.constant dense<0.000000e+00> : vector<1x256xf32>
      %146 = tpu.matmul %143, %145, %cst_115 {dimension_numbers = #tpu.dot_dimension_numbers<[1], [0], [0], [1], [0, 0, 1, 1], [], []>} : vector<1x32xbf16>, vector<32x256xbf16>, vector<1x256xf32> -> vector<1x256xf32>
      %147 = vector.extract_strided_slice %46 {offsets = [5, 0], sizes = [1, 32], strides = [1, 1]} : vector<18x32xbf16> to vector<1x32xbf16>
      %c5 = arith.constant 5 : index
      %c0_116 = arith.constant 0 : index
      %c0_117 = arith.constant 0 : index
      %148 = vector.load %arg5[%c5, %c0_116, %c0_117] : memref<7x32x32xbf16, #tpu.memory_space<vmem>>, vector<1x32x32xbf16>
      %149 = vector.shape_cast %148 : vector<1x32x32xbf16> to vector<32x32xbf16>
      %cst_118 = arith.constant dense<0.000000e+00> : vector<1x32xf32>
      %150 = tpu.matmul %147, %149, %cst_118 {dimension_numbers = #tpu.dot_dimension_numbers<[1], [0], [0], [1], [0, 0, 1, 1], [], []>} : vector<1x32xbf16>, vector<32x32xbf16>, vector<1x32xf32> -> vector<1x32xf32>
      %c5_119 = arith.constant 5 : index
      %c0_120 = arith.constant 0 : index
      %151 = vector.load %arg6[%c5_119, %c0_120] : memref<7x32xf32, #tpu.memory_space<vmem>>, vector<1x32xf32>
      %152 = arith.addf %150, %151 : vector<1x32xf32>
      %cst_121 = arith.constant 0.000000e+00 : f32
      %153 = vector.broadcast %cst_121 : f32 to vector<1x32xf32>
      %154 = arith.maximumf %152, %153 : vector<1x32xf32>
      %155 = arith.truncf %154 : vector<1x32xf32> to vector<1x32xbf16>
      %c5_122 = arith.constant 5 : index
      %c0_123 = arith.constant 0 : index
      %c0_124 = arith.constant 0 : index
      %156 = vector.load %arg7[%c5_122, %c0_123, %c0_124] : memref<7x32x32xbf16, #tpu.memory_space<vmem>>, vector<1x32x32xbf16>
      %157 = vector.shape_cast %156 : vector<1x32x32xbf16> to vector<32x32xbf16>
      %cst_125 = arith.constant dense<0.000000e+00> : vector<1x32xf32>
      %158 = tpu.matmul %155, %157, %cst_125 {dimension_numbers = #tpu.dot_dimension_numbers<[1], [0], [0], [1], [0, 0, 1, 1], [], []>} : vector<1x32xbf16>, vector<32x32xbf16>, vector<1x32xf32> -> vector<1x32xf32>
      %c5_126 = arith.constant 5 : index
      %c0_127 = arith.constant 0 : index
      %159 = vector.load %arg8[%c5_126, %c0_127] : memref<7x32xf32, #tpu.memory_space<vmem>>, vector<1x32xf32>
      %160 = arith.addf %158, %159 : vector<1x32xf32>
      %cst_128 = arith.constant 0.000000e+00 : f32
      %161 = vector.broadcast %cst_128 : f32 to vector<1x32xf32>
      %162 = arith.maximumf %160, %161 : vector<1x32xf32>
      %163 = arith.truncf %162 : vector<1x32xf32> to vector<1x32xbf16>
      %c5_129 = arith.constant 5 : index
      %c0_130 = arith.constant 0 : index
      %c0_131 = arith.constant 0 : index
      %164 = vector.load %arg9[%c5_129, %c0_130, %c0_131] : memref<7x32x256xbf16, #tpu.memory_space<vmem>>, vector<1x32x256xbf16>
      %165 = vector.shape_cast %164 : vector<1x32x256xbf16> to vector<32x256xbf16>
      %cst_132 = arith.constant dense<0.000000e+00> : vector<1x256xf32>
      %166 = tpu.matmul %163, %165, %cst_132 {dimension_numbers = #tpu.dot_dimension_numbers<[1], [0], [0], [1], [0, 0, 1, 1], [], []>} : vector<1x32xbf16>, vector<32x256xbf16>, vector<1x256xf32> -> vector<1x256xf32>
      %167 = vector.extract_strided_slice %46 {offsets = [6, 0], sizes = [1, 32], strides = [1, 1]} : vector<18x32xbf16> to vector<1x32xbf16>
      %c6 = arith.constant 6 : index
      %c0_133 = arith.constant 0 : index
      %c0_134 = arith.constant 0 : index
      %168 = vector.load %arg5[%c6, %c0_133, %c0_134] : memref<7x32x32xbf16, #tpu.memory_space<vmem>>, vector<1x32x32xbf16>
      %169 = vector.shape_cast %168 : vector<1x32x32xbf16> to vector<32x32xbf16>
      %cst_135 = arith.constant dense<0.000000e+00> : vector<1x32xf32>
      %170 = tpu.matmul %167, %169, %cst_135 {dimension_numbers = #tpu.dot_dimension_numbers<[1], [0], [0], [1], [0, 0, 1, 1], [], []>} : vector<1x32xbf16>, vector<32x32xbf16>, vector<1x32xf32> -> vector<1x32xf32>
      %c6_136 = arith.constant 6 : index
      %c0_137 = arith.constant 0 : index
      %171 = vector.load %arg6[%c6_136, %c0_137] : memref<7x32xf32, #tpu.memory_space<vmem>>, vector<1x32xf32>
      %172 = arith.addf %170, %171 : vector<1x32xf32>
      %cst_138 = arith.constant 0.000000e+00 : f32
      %173 = vector.broadcast %cst_138 : f32 to vector<1x32xf32>
      %174 = arith.maximumf %172, %173 : vector<1x32xf32>
      %175 = arith.truncf %174 : vector<1x32xf32> to vector<1x32xbf16>
      %c6_139 = arith.constant 6 : index
      %c0_140 = arith.constant 0 : index
      %c0_141 = arith.constant 0 : index
      %176 = vector.load %arg7[%c6_139, %c0_140, %c0_141] : memref<7x32x32xbf16, #tpu.memory_space<vmem>>, vector<1x32x32xbf16>
      %177 = vector.shape_cast %176 : vector<1x32x32xbf16> to vector<32x32xbf16>
      %cst_142 = arith.constant dense<0.000000e+00> : vector<1x32xf32>
      %178 = tpu.matmul %175, %177, %cst_142 {dimension_numbers = #tpu.dot_dimension_numbers<[1], [0], [0], [1], [0, 0, 1, 1], [], []>} : vector<1x32xbf16>, vector<32x32xbf16>, vector<1x32xf32> -> vector<1x32xf32>
      %c6_143 = arith.constant 6 : index
      %c0_144 = arith.constant 0 : index
      %179 = vector.load %arg8[%c6_143, %c0_144] : memref<7x32xf32, #tpu.memory_space<vmem>>, vector<1x32xf32>
      %180 = arith.addf %178, %179 : vector<1x32xf32>
      %cst_145 = arith.constant 0.000000e+00 : f32
      %181 = vector.broadcast %cst_145 : f32 to vector<1x32xf32>
      %182 = arith.maximumf %180, %181 : vector<1x32xf32>
      %183 = arith.truncf %182 : vector<1x32xf32> to vector<1x32xbf16>
      %c6_146 = arith.constant 6 : index
      %c0_147 = arith.constant 0 : index
      %c0_148 = arith.constant 0 : index
      %184 = vector.load %arg9[%c6_146, %c0_147, %c0_148] : memref<7x32x256xbf16, #tpu.memory_space<vmem>>, vector<1x32x256xbf16>
      %185 = vector.shape_cast %184 : vector<1x32x256xbf16> to vector<32x256xbf16>
      %cst_149 = arith.constant dense<0.000000e+00> : vector<1x256xf32>
      %186 = tpu.matmul %183, %185, %cst_149 {dimension_numbers = #tpu.dot_dimension_numbers<[1], [0], [0], [1], [0, 0, 1, 1], [], []>} : vector<1x32xbf16>, vector<32x256xbf16>, vector<1x256xf32> -> vector<1x256xf32>
      %187 = arith.addf %66, %86 : vector<1x256xf32>
      %188 = arith.addf %106, %126 : vector<1x256xf32>
      %189 = arith.addf %146, %166 : vector<1x256xf32>
      %190 = arith.addf %187, %188 : vector<1x256xf32>
      %191 = arith.addf %189, %186 : vector<1x256xf32>
      %192 = arith.addf %190, %191 : vector<1x256xf32>
      %c0_150 = arith.constant 0 : index
      %c0_151 = arith.constant 0 : index
      %193 = vector.load %arg10[%c0_150, %c0_151] : memref<1x256xf32, #tpu.memory_space<vmem>>, vector<1x256xf32>
      %194 = arith.addf %192, %193 : vector<1x256xf32>
      %c0_152 = arith.constant 0 : index
      %c0_153 = arith.constant 0 : index
      %c0_154 = arith.constant 0 : index
      %195 = vector.load %arg17[%c0_152, %c0_153, %c0_154] : memref<1x1x256xf32, #tpu.memory_space<vmem>>, vector<1x1x256xf32>
      %196 = vector.shape_cast %195 : vector<1x1x256xf32> to vector<1x256xf32>
      %197 = vector.shape_cast %194 : vector<1x256xf32> to vector<1x1x256xf32>
      tpu.vector_store %arg17[%c0_152, %c0_153, %c0_154], %197 {strides = array<i32>} : memref<1x1x256xf32, #tpu.memory_space<vmem>>, vector<1x1x256xf32>,
      %198 = vector.extract_strided_slice %46 {offsets = [7, 0], sizes = [11, 32], strides = [1, 1]} : vector<18x32xbf16> to vector<11x32xbf16>
      %c0_155 = arith.constant 0 : index
      %c0_156 = arith.constant 0 : index
      %199 = vector.load %arg11[%c0_155, %c0_156] : memref<32x32xbf16, #tpu.memory_space<vmem>>, vector<32x32xbf16>
      %cst_157 = arith.constant dense<0.000000e+00> : vector<11x32xf32>
      %200 = tpu.matmul %198, %199, %cst_157 {dimension_numbers = #tpu.dot_dimension_numbers<[1], [0], [0], [1], [0, 0, 1, 1], [], []>} : vector<11x32xbf16>, vector<32x32xbf16>, vector<11x32xf32> -> vector<11x32xf32>
      %c0_158 = arith.constant 0 : index
      %c0_159 = arith.constant 0 : index
      %201 = vector.load %arg12[%c0_158, %c0_159] : memref<1x32xf32, #tpu.memory_space<vmem>>, vector<1x32xf32>
      %202 = vector.broadcast %201 : vector<1x32xf32> to vector<11x32xf32>
      %203 = arith.addf %200, %202 : vector<11x32xf32>
      %cst_160 = arith.constant 0.000000e+00 : f32
      %204 = vector.broadcast %cst_160 : f32 to vector<11x32xf32>
      %205 = arith.maximumf %203, %204 : vector<11x32xf32>
      %206 = arith.truncf %205 : vector<11x32xf32> to vector<11x32xbf16>
      %c0_161 = arith.constant 0 : index
      %c0_162 = arith.constant 0 : index
      %207 = vector.load %arg13[%c0_161, %c0_162] : memref<32x32xbf16, #tpu.memory_space<vmem>>, vector<32x32xbf16>
      %cst_163 = arith.constant dense<0.000000e+00> : vector<11x32xf32>
      %208 = tpu.matmul %206, %207, %cst_163 {dimension_numbers = #tpu.dot_dimension_numbers<[1], [0], [0], [1], [0, 0, 1, 1], [], []>} : vector<11x32xbf16>, vector<32x32xbf16>, vector<11x32xf32> -> vector<11x32xf32>
      %c0_164 = arith.constant 0 : index
      %c0_165 = arith.constant 0 : index
      %209 = vector.load %arg14[%c0_164, %c0_165] : memref<1x32xf32, #tpu.memory_space<vmem>>, vector<1x32xf32>
      %210 = vector.broadcast %209 : vector<1x32xf32> to vector<11x32xf32>
      %211 = arith.addf %208, %210 : vector<11x32xf32>
      %cst_166 = arith.constant 0.000000e+00 : f32
      %212 = vector.broadcast %cst_166 : f32 to vector<11x32xf32>
      %213 = arith.maximumf %211, %212 : vector<11x32xf32>
      %214 = arith.truncf %213 : vector<11x32xf32> to vector<11x32xbf16>
      %c0_167 = arith.constant 0 : index
      %c0_168 = arith.constant 0 : index
      %215 = vector.load %arg15[%c0_167, %c0_168] : memref<32x4xbf16, #tpu.memory_space<vmem>>, vector<32x4xbf16>
      %cst_169 = arith.constant dense<0.000000e+00> : vector<11x4xf32>
      %216 = tpu.matmul %214, %215, %cst_169 {dimension_numbers = #tpu.dot_dimension_numbers<[1], [0], [0], [1], [0, 0, 1, 1], [], []>} : vector<11x32xbf16>, vector<32x4xbf16>, vector<11x4xf32> -> vector<11x4xf32>
      %c0_170 = arith.constant 0 : index
      %c0_171 = arith.constant 0 : index
      %217 = vector.load %arg16[%c0_170, %c0_171] : memref<1x4xf32, #tpu.memory_space<vmem>>, vector<1x4xf32>
      %218 = vector.broadcast %217 : vector<1x4xf32> to vector<11x4xf32>
      %219 = arith.addf %216, %218 : vector<11x4xf32>
      %c0_172 = arith.constant 0 : index
      %c0_173 = arith.constant 0 : index
      %c0_174 = arith.constant 0 : index
      %220 = vector.load %arg18[%c0_172, %c0_173, %c0_174] : memref<1x11x4xf32, #tpu.memory_space<vmem>>, vector<1x11x4xf32>
      %221 = vector.shape_cast %220 : vector<1x11x4xf32> to vector<11x4xf32>
      %222 = vector.shape_cast %219 : vector<11x4xf32> to vector<1x11x4xf32>
      tpu.vector_store %arg18[%c0_172, %c0_173, %c0_174], %222 {strides = array<i32>} : memref<1x11x4xf32, #tpu.memory_space<vmem>>, vector<1x11x4xf32>,
    } else {
    }
    return
  }
  func.func @transform_0(%arg0: i32, %arg1: i32) -> (i32, i32) {
    %c0_i32 = arith.constant 0 : i32
    %c0_i32_0 = arith.constant 0 : i32
    %c0_i32_1 = arith.constant 0 : i32
    return %c0_i32, %c0_i32_0 : i32, i32
  }
  func.func @transform_1(%arg0: i32, %arg1: i32) -> (i32, i32, i32) {
    %c0_i32 = arith.constant 0 : i32
    %c0_i32_0 = arith.constant 0 : i32
    return %arg0, %arg1, %c0_i32 : i32, i32, i32
  }
  func.func @transform_2(%arg0: i32, %arg1: i32) -> (i32, i32, i32) {
    %c0_i32 = arith.constant 0 : i32
    %c0_i32_0 = arith.constant 0 : i32
    %c0_i32_1 = arith.constant 0 : i32
    return %c0_i32, %arg1, %c0_i32_0 : i32, i32, i32
  }
  func.func @transform_3(%arg0: i32, %arg1: i32) -> (i32, i32, i32) {
    %c0_i32 = arith.constant 0 : i32
    %c0_i32_0 = arith.constant 0 : i32
    %c0_i32_1 = arith.constant 0 : i32
    %c0_i32_2 = arith.constant 0 : i32
    return %c0_i32, %c0_i32_0, %c0_i32_1 : i32, i32, i32
  }
  func.func @transform_4(%arg0: i32, %arg1: i32) -> (i32, i32) {
    %c0_i32 = arith.constant 0 : i32
    %c0_i32_0 = arith.constant 0 : i32
    %c0_i32_1 = arith.constant 0 : i32
    return %c0_i32, %c0_i32_0 : i32, i32
  }
  func.func @transform_5(%arg0: i32, %arg1: i32) -> (i32, i32, i32) {
    %c0_i32 = arith.constant 0 : i32
    %c0_i32_0 = arith.constant 0 : i32
    %c0_i32_1 = arith.constant 0 : i32
    %c0_i32_2 = arith.constant 0 : i32
    return %c0_i32, %c0_i32_0, %c0_i32_1 : i32, i32, i32
  }
  func.func @transform_6(%arg0: i32, %arg1: i32) -> (i32, i32) {
    %c0_i32 = arith.constant 0 : i32
    %c0_i32_0 = arith.constant 0 : i32
    %c0_i32_1 = arith.constant 0 : i32
    return %c0_i32, %c0_i32_0 : i32, i32
  }
  func.func @transform_7(%arg0: i32, %arg1: i32) -> (i32, i32, i32) {
    %c0_i32 = arith.constant 0 : i32
    %c0_i32_0 = arith.constant 0 : i32
    %c0_i32_1 = arith.constant 0 : i32
    %c0_i32_2 = arith.constant 0 : i32
    return %c0_i32, %c0_i32_0, %c0_i32_1 : i32, i32, i32
  }
  func.func @transform_8(%arg0: i32, %arg1: i32) -> (i32, i32) {
    %c0_i32 = arith.constant 0 : i32
    %c0_i32_0 = arith.constant 0 : i32
    %c0_i32_1 = arith.constant 0 : i32
    return %c0_i32, %c0_i32_0 : i32, i32
  }
  func.func @transform_9(%arg0: i32, %arg1: i32) -> (i32, i32) {
    %c0_i32 = arith.constant 0 : i32
    %c0_i32_0 = arith.constant 0 : i32
    %c0_i32_1 = arith.constant 0 : i32
    return %c0_i32, %c0_i32_0 : i32, i32
  }
  func.func @transform_10(%arg0: i32, %arg1: i32) -> (i32, i32) {
    %c0_i32 = arith.constant 0 : i32
    %c0_i32_0 = arith.constant 0 : i32
    %c0_i32_1 = arith.constant 0 : i32
    return %c0_i32, %c0_i32_0 : i32, i32
  }
  func.func @transform_11(%arg0: i32, %arg1: i32) -> (i32, i32) {
    %c0_i32 = arith.constant 0 : i32
    %c0_i32_0 = arith.constant 0 : i32
    %c0_i32_1 = arith.constant 0 : i32
    return %c0_i32, %c0_i32_0 : i32, i32
  }
  func.func @transform_12(%arg0: i32, %arg1: i32) -> (i32, i32) {
    %c0_i32 = arith.constant 0 : i32
    %c0_i32_0 = arith.constant 0 : i32
    %c0_i32_1 = arith.constant 0 : i32
    return %c0_i32, %c0_i32_0 : i32, i32
  }
  func.func @transform_13(%arg0: i32, %arg1: i32) -> (i32, i32) {
    %c0_i32 = arith.constant 0 : i32
    %c0_i32_0 = arith.constant 0 : i32
    %c0_i32_1 = arith.constant 0 : i32
    return %c0_i32, %c0_i32_0 : i32, i32
  }
  func.func @transform_14(%arg0: i32, %arg1: i32) -> (i32, i32) {
    %c0_i32 = arith.constant 0 : i32
    %c0_i32_0 = arith.constant 0 : i32
    %c0_i32_1 = arith.constant 0 : i32
    return %c0_i32, %c0_i32_0 : i32, i32
  }
  func.func @transform_15(%arg0: i32, %arg1: i32) -> (i32, i32, i32) {
    %c0_i32 = arith.constant 0 : i32
    %c0_i32_0 = arith.constant 0 : i32
    %c0_i32_1 = arith.constant 0 : i32
    return %arg0, %c0_i32, %c0_i32_0 : i32, i32, i32
  }
  func.func @transform_16(%arg0: i32, %arg1: i32) -> (i32, i32, i32) {
    %c0_i32 = arith.constant 0 : i32
    %c0_i32_0 = arith.constant 0 : i32
    %c0_i32_1 = arith.constant 0 : i32
    return %arg0, %c0_i32, %c0_i32_0 : i32, i32, i32
  }
}

</mosaic_0001>

<bundles_post_ra>
// kernel: tpu_custom_call.1
= control target key start
LH: loop header
LB: loop body
LE: loop exit
PB: predicated region body
PF: predicated region fallthrough
CT: control target
= control target key end

     0   :  { %s4146_s0 = inlined_call_operand.vmem [shape: f32[18,32], index: 0, kind: input, shape index: {}]   ;;  %s4147_s1 = inlined_call_operand.vmem [shape: bf16[2,64,32], index: 1, kind: input, shape index: {}]   ;;  %s4148_s2 = inlined_call_operand.vmem [shape: bf16[1,64,32], index: 2, kind: input, shape index: {}]   ;;  %s4149_s3 = inlined_call_operand.vmem [shape: bf16[7,32,32], index: 3, kind: input, shape index: {}]   ;;  %s4150_s4 = inlined_call_operand.hbm [shape: f32[7,32], index: 4, kind: input, shape index: {}]   ;;  %s4151_s5 = inlined_call_operand.hbm [shape: bf16[7,32,32], index: 5, kind: input, shape index: {}]   ;;  %s4152_s6 = inlined_call_operand.hbm [shape: f32[7,32], index: 6, kind: input, shape index: {}]   ;;  %s4153_s7 = inlined_call_operand.hbm [shape: bf16[7,32,256], index: 7, kind: input, shape index: {}]   ;;  %s4154_s8 = inlined_call_operand.vmem [shape: f32[1,256], index: 8, kind: input, shape index: {}]   ;;  %s4155_s9 = inlined_call_operand.vmem [shape: bf16[32,32], index: 9, kind: input, shape index: {}]   ;;  %s4156_s10 = inlined_call_operand.vmem [shape: f32[1,32], index: 10, kind: input, shape index: {}]   ;;  %s4157_s11 = inlined_call_operand.vmem [shape: bf16[32,32], index: 11, kind: input, shape index: {}]   ;;  %s4158_s12 = inlined_call_operand.vmem [shape: f32[1,32], index: 12, kind: input, shape index: {}]   ;;  %s4159_s13 = inlined_call_operand.vmem [shape: bf16[32,4], index: 13, kind: input, shape index: {}]   ;;  %s4160_s14 = inlined_call_operand.vmem [shape: f32[1,4], index: 14, kind: input, shape index: {}]   ;;  %s4161_s15 = inlined_call_operand.hbm [shape: f32[2,1,256], index: 15, kind: output, shape index: {0}]   ;;  %s4162_s16 = inlined_call_operand.vmem [shape: f32[2,11,4], index: 16, kind: output, shape index: {1}]  }
   0x1   :  { %4180 = sst [smem:[#allocation28_spill]] %s4146_s0 }
   0x2   :  { %4181 = sst [smem:[#allocation29_spill]] %s4150_s4 }
   0x3   :  { %4182 = sst [smem:[#allocation30_spill]] %s4151_s5 }
   0x4   :  { %4183 = sst [smem:[#allocation31_spill]] %s4152_s6 }
   0x5   :  { %4184 = sst [smem:[#allocation32_spill]] %s4153_s7 }
   0x6   :  { %4185 = sst [smem:[#allocation33_spill]] %s4160_s14 }
   0x7   :  { %4186 = sst [smem:[#allocation34_spill]] %s4161_s15 }
   0x8   :  { %22 = vsyncpa [#allocation6], 0 }
   0x9   :  { %23 = vsyncpa [#allocation9], 0 }
   0xa   :  { %24 = vsyncpa [#allocation12], 0 }
   0xb   :  { %25 = vsyncpa [#allocation7], 0 }
   0xc   :  { %27 = vsyncpa [#allocation7 + $0x1], 0  ;;  %s3668_s21 = smov 0   ;;  %s3670_s22 = smov 0  }
   0xd   :  { %s3672_s23 = smov 0   ;;  %s3674_s24 = smov 0  }
   0xe   :  { %s3676_s25 = smov 0   ;;  %s3678_s26 = smov 0  }
   0xf   :  { %s3680_s27 = smov 0   ;;  %s3682_s28 = smov 0  }
  0x10 LB: > { %4187 = sst [smem:[#allocation18_spill]] %s3537_s21  ;;  %s2772_s29 = sadd.s32 4294967295, %s3565_s28   ;;  %s3565_s28 = sphi %s3682_s28, %s33_s28   ;;  %s3561_s27 = sphi %s3680_s27, %s4224_s27   ;;  %s3557_s26 = sphi %s3678_s26, %s4223_s26   ;;  %s3553_s25 = sphi %s3676_s25, %s4222_s25   ;;  %s3549_s24 = sphi %s3674_s24, %s4221_s24   ;;  %s3545_s23 = sphi %s3672_s23, %s4220_s23   ;;  %s3541_s22 = sphi %s3670_s22, %s4226_s22   ;;  %s3537_s21 = sphi %s3668_s21, %s4225_s21  }
  0x11   : > { %4188 = sst [smem:[#allocation19_spill]] %s3545_s23  ;;  %s2773_s30 = sadd.s32 4294967294, %s3565_s28  }
  0x12   : > { %4189 = sst [smem:[#allocation20_spill]] %s3557_s26  ;;  %s42_s0 = sadd.s32 1, %s3557_s26 }
  0x13   : > { %4190 = sst [smem:[#allocation21_spill]] %s3561_s27  ;;  %s45_s17 = sadd.s32 1, %s3561_s27 }
  0x14   : > { %4191 = sst [smem:[#allocation22_spill]] %s3565_s28  ;;  %p43_p0 = scmp.ge.s32.totalorder %s42_s0, 2 }
  0x15   : > { %s379_s18 = sadd.s32 1, %s3545_s23  ;;  %p389_p1 = scmp.ne.s32.totalorder %s3545_s23, %s3541_s22 }
  0x16   : > { %p390_p2 = scmp.eq.s32.totalorder %s2772_s29, 3  ;;  %s4228_s0 = smov (%p43_p0, %s42_s0), 0 }
  0x17   : > { %4192 = sst [smem:[#allocation23_spill]] %s4228_s0  ;;  %s4230_s17 = smov (!%p43_p0, %s45_s17), %s3561_s27 }
  0x18   : > { %p3718_p3 = por %p390_p2, %p389_p1  ;;  %p395_p4 = scmp.ne.s32.totalorder %s3541_s22, %s3537_s21 }
  0x19   : > { %p47_p5 = scmp.ge.s32.totalorder %s4230_s17, 2  ;;  %p396_p6 = scmp.eq.s32.totalorder %s2773_s30, 3 }
  0x1a   : > { %s4193_s19 = scalar_select %p3718_p3, 1, 0 }
  0x1b   : > { %p2774_p7 = scmp.ge.s32.totalorder %s3565_s28, 1  ;;  %p429_p8 = scmp.lt.s32.totalorder %s3565_s28, 5 }
  0x1c   : > { %4194 = sst [smem:[#allocation24_spill]] %s4193_s19  ;;  %s4232_s17 = smov (%p47_p5, %s4230_s17), 0 }
  0x1d   : > { %4195 = sst [smem:[#allocation25_spill]] %s4232_s17  ;;  %p3728_p9 = por %p396_p6, %p395_p4 }
  0x1e   : > { %p3732_p10 = pnand %p2774_p7, %p429_p8  ;;  %s376_s0 = ssub.s32 %s3561_s27, %s4232_s17 }
  0x1f   : > { %s4196_s20 = scalar_select %p3728_p9, 1, 0 }
  0x20   : > { %s4198_s26 = scalar_select %p3732_p10, 1, 0 }
  0x21   : > { %4197 = sst [smem:[#allocation26_spill]] %s4196_s20  ;;  %p377_p11 = scmp.eq.s32.totalorder %s376_s0, 0 }
  0x22   : > { %p3154_p12 = pneg %p3732_p10  ;;  %p3740_p13 = scmp.eq.s32.totalorder %s2772_s29, 0 }
  0x23   : > { %s3745_s21 = scalar_select %p377_p11, %s3545_s23, %s379_s18  }
  0x24   : > { %s4199_s30 = scalar_select %p3740_p13, 1, 0 }
  0x25   : > { %4200 = sst [smem:[#allocation27_spill]] %s3745_s21  ;;  %p3749_p0 = pnand %p3740_p13, %p3154_p12 }
  0x26   : > { %s3567_s20 = smov [#allocation8]  }
  0x27   : > { %s458_s15 = sshll.u32 %s3567_s20, 4  ;;  %p3359_p1 = pneg %p3749_p0  ;;  %s459_s15 = int_to_ptr.vmem [resolvable:$true] %s458_s15 }
  0x28   : > { %s3368_s0 = scalar_lea.vmem %s459_s15, 1792  ;;  %p3376_p6 = scmp.lt.s32.totalorder %s459_s15, %s459_s15 }
  0x29   : > { %p3369_p2 = scmp.ne.s32.totalorder %s459_s15, %s3368_s0  ;;  %p3377_p7 = scmp.lt.s32.totalorder %s3368_s0, %s3368_s0 }
  0x2b   : > { %p3371_p4 = pnand %p3369_p2, %p3359_p1  ;;  %p3378_p8 = por %p3377_p7, %p3376_p6 }
  0x2d   : > { %p3372_p5 = pneg %p3371_p4 }
  0x2f   : > { %p3379_p11 = pnand %p3378_p8, %p3372_p5 }
  0x31   : > { %3382 = shalt.err (!%p3379_p11)
}
  0x32   : > { %s3568_s29 = smov 64   ;;  %s3569_s18 = smov 4  }
  0x33   : > { %s4202_s5 = sld [smem:[#allocation30_spill]]  ;;  %s3570_s27 = smov [#allocation5]  }
  0x34   : > { %s448_s21 = sshll.u32 %s3570_s27, 4  ;;  %s3571_s23 = smov [#allocation10]   ;;  %s449_s21 = int_to_ptr.vmem [resolvable:$true] %s448_s21 }
  0x35   : > { %s472_s19 = sshll.u32 %s3571_s23, 4  ;;  %s3394_s14 = scalar_lea.vmem %s449_s21, 128  ;;  %s473_s19 = int_to_ptr.vmem [resolvable:$true] %s472_s19 }
  0x36   : > { %p3395_p12 = scmp.ne.s32.totalorder %s449_s21, %s3394_s14  ;;  %p3402_p5 = scmp.lt.s32.totalorder %s449_s21, %s449_s21 }
  0x37   : > { %p3403_p6 = scmp.lt.s32.totalorder %s3394_s14, %s3394_s14 }
  0x38   : > { %p3397_p2 = pnand %p3395_p12, %p3359_p1 }
  0x39   : > { %3160 = dma.hbm_to_vmem [thread:$0]  (!%p3749_p0), %s4202_s5, 1792, %s459_s15, [#allocation9], %s3568_s29, %s3568_s29, %s3569_s18  }
  0x3a   : > { %p3398_p4 = pneg %p3397_p2  ;;  %p3404_p7 = por %p3403_p6, %p3402_p5 }
  0x3c   : > { %p3405_p8 = pnand %p3404_p7, %p3398_p4 }
  0x3e   : > { %3408 = shalt.err (!%p3405_p8)
}
  0x3f   : > { %s4203_s4 = sld [smem:[#allocation29_spill]]  ;;  %s3420_s23 = scalar_lea.vmem %s473_s19, 128 }
  0x40   : > { %p3421_p11 = scmp.ne.s32.totalorder %s473_s19, %s3420_s23  ;;  %p3428_p12 = scmp.lt.s32.totalorder %s473_s19, %s473_s19 }
  0x41   : > { %p3429_p2 = scmp.lt.s32.totalorder %s3420_s23, %s3420_s23 }
  0x42   : > { %p3423_p9 = pnand %p3421_p11, %p3359_p1 }
  0x43   : > { %p3430_p13 = por %p3429_p2, %p3428_p12 }
  0x44   : > { %p3424_p3 = pneg %p3423_p9 }
  0x45   : > { %3157 = dma.hbm_to_vmem [thread:$0]  (!%p3749_p0), %s4203_s4, 128, %s449_s21, [#allocation6]  }
  0x46   : > { %p3431_p10 = pnand %p3430_p13, %p3424_p3 }
  0x48   : > { %3434 = shalt.err (!%p3431_p10)
}
  0x49   : > { %s4204_s6 = sld [smem:[#allocation31_spill]]  ;;  %s3572_s0 = smov [#allocation11]  }
  0x4a   : > { %s482_s21 = sshll.u32 %s3572_s0, 4  ;;  %s483_s21 = int_to_ptr.vmem [resolvable:$true] %s482_s21 }
  0x4b   : > { %s3446_s29 = scalar_lea.vmem %s483_s21, 3584  ;;  %p3454_p6 = scmp.lt.s32.totalorder %s483_s21, %s483_s21 }
  0x4c   : > { %p3447_p4 = scmp.ne.s32.totalorder %s483_s21, %s3446_s29  ;;  %p3455_p7 = scmp.lt.s32.totalorder %s3446_s29, %s3446_s29 }
  0x4e   : > { %p3449_p9 = pnand %p3447_p4, %p3359_p1  ;;  %p3456_p3 = por %p3455_p7, %p3454_p6 }
  0x4f   : > { %3163 = dma.hbm_to_vmem [thread:$0]  (!%p3749_p0), %s4204_s6, 128, %s473_s19, [#allocation9]  }
  0x50   : > { %p3450_p5 = pneg %p3449_p9 }
  0x52   : > { %p3457_p10 = pnand %p3456_p3, %p3450_p5 }
  0x54   : > { %3460 = shalt.err (!%p3457_p10)
}
  0x55   : > { %s3573_s18 = smov 128   ;;  %s3574_s20 = smov 8  }
  0x56   : > { %s4205_s7 = sld [smem:[#allocation32_spill]]  ;;  %p4206_p13 = scmp.ne.s32.totalorder %s4198_s26, 0 }
  0x57   : > { %p4207_p8 = scmp.ne.s32.totalorder (!%p4206_p13), %s4199_s30, 0 }
  0x58   : > { %541 = sbr.rel (%p4206_p13) target bundleno = 2670 (0xa6e), region = 80 }
  0x5c   : > { %3166 = dma.hbm_to_vmem [thread:$0]  (!%p3749_p0), %s4205_s7, 3584, %s483_s21, [#allocation12], %s3573_s18, %s3573_s18, %s3574_s20  }
  0x5d   : > { %3520 = dma.done.wait (%p4207_p8), [#allocation6], 128  }
  0x5e   : > { %3522 = vsyncadd (%p4207_p8), [#allocation6], 4294967168 }
  0x5f   : > { %3524 = dma.done.wait (%p4207_p8), [#allocation9], 1920  }
  0x60   : > { %3526 = vsyncadd (%p4207_p8), [#allocation9], 4294965376 }
  0x61   : > { %3528 = dma.done.wait (%p4207_p8), [#allocation12], 3584  }
  0x62   : > { %3530 = vsyncadd (%p4207_p8), [#allocation12], 4294963712  ;;  %s4179_s26 = sand.u32 1, %s3541_s22   ;;  %s2786_s28 = sshll.u32 %s3549_s24, 2 }
  0x63   : > { %s3805_s17 = sshll.u32 %s4179_s26, 1  ;;  %p618_p0 = scmp.lt.s32.totalorder %s3553_s25, 1 }
  0x64   : > { %p620_p1 = scmp.lt.s32.totalorder %s2786_s28, 7  ;;  %s609_s7 = scalar_lea.vmem [#allocation13], %s3805_s17 }
  0x65   : > { %s619_s23 = scalar_select %p618_p0, %s3553_s25, 1 }
  0x66   : > { %s4234_s28 = smov (!%p620_p1, %s2786_s28), 7  ;;  %p2793_p11 = scmp.ne.s32.totalorder %s3549_s24, 0 }
  0x67   : > { %s2787_s14 = sshll.u32 %s619_s23, 3  ;;  %s2921_s27 = sshll.u32 %s619_s23, 4 }
  0x68   : > { %s623_s0 = sadd.s32 %s2787_s14, %s4234_s28  ;;  %s2790_s30 = sshll.u32 %s4234_s28, 2 }
  0x69   : > { %s2788_s21 = sshll.u32 %s623_s0, 2  ;;  %s3812_s20 = scalar_lea.vmem %s4148_s2, %s2790_s30 }
  0x6a   : > { %s625_s26 = scalar_lea.vmem %s4147_s1, %s2788_s21  ;;  %s3820_s6 = scalar_lea.vmem %s4162_s16, %s2921_s27 }
  0x6b   : > { %642 = sbr.rel (%p2793_p11) target bundleno = 118 (0x76), region = 100 }
  0x70   : > { %vm643_vm0 = vcmask 7168   ;;  %vm646_vm1 = vcmask 1024   ;;  %v3575_v0 = vmov -inf   ;;  %v3576_v1 = vmov 0.0  }
  0x71   : > { %644 = vst.msk [vmem:[#allocation2] sm:$0xff] %vm643_vm0, %v3575_v0  ;;  %645 = vst.msk [vmem:[#allocation2 + $0x8] sm:$0xff] %vm643_vm0, %v3575_v0  ;;  %vm651_vm2 = vcmask 261120   ;;  %vm654_vm3 = vcmask 254976  }
  0x72   : > { %647 = vst.msk [vmem:[#allocation2 + $0x10] sm:$0x3] %vm646_vm1, %v3575_v0  ;;  %650 = vst.msk [vmem:[#allocation3 + $0x10] sm:$0x3] %vm646_vm1, %v3576_v1 }
  0x73   : > { %648 = vst.msk [vmem:[#allocation3] sm:$0xff] %vm643_vm0, %v3576_v1  ;;  %649 = vst.msk [vmem:[#allocation3 + $0x8] sm:$0xff] %vm643_vm0, %v3576_v1 }
  0x74   : > { %652 = vst.msk [vmem:[#allocation4] sm:$0xff] %vm651_vm2, %v3576_v1  ;;  %653 = vst.msk [vmem:[#allocation4 + $0x8] sm:$0xff] %vm651_vm2, %v3576_v1 }
  0x75   : > { %655 = vst.msk [vmem:[#allocation4 + $0x10] sm:$0x3] %vm654_vm3, %v3576_v1 }
  0x76 PF: > { %v3824_v2 = vld [vmem:[%s625_s26 + $0x8] sm:$0xf]  ;;  %v3826_v3 = vld [vmem:[%s625_s26 + $0xc] sm:$0xf]  ;;  %v3831_v7 = vld [vmem:[%s625_s26] sm:$0xf] }
  0x77   : > { %v665_v4 = vld [vmem:[%s3812_s20 + $0x8] sm:$0xf]  ;;  %v666_v5 = vld [vmem:[%s3812_s20 + $0xc] sm:$0xf]  ;;  %s4208_s28 = sld [smem:[#allocation28_spill]]  ;;  %vm683_vm4 = vcmask 261120   ;;  %v2799_v47 = vcombine.low %v3824_v2, %v3826_v3 }
  0x78   : > { %v669_v6 = vadd.bf16 %v665_v4, %v3824_v2  ;;  %v670_v9 = vadd.bf16 %v666_v5, %v3826_v3  ;;  %v660_v10 = vld [vmem:[%s625_s26 + $0x4] sm:$0xf]  ;;  %v663_v11 = vld [vmem:[%s3812_s20] sm:$0xf]  ;;  %vm756_vm5 = vcmask 254976   ;;  %v3577_v33 = vmov 0  }
  0x79   : > { %v664_v12 = vld [vmem:[%s3812_s20 + $0x4] sm:$0xf]  ;;  %v667_v13 = vadd.bf16 %v663_v11, %v3831_v7  ;;  %3259 = vset.pattern.permute.xlu1 %v3577_v33  ;;  %3260 = vset.pattern.permute.xlu0 %v3577_v33  ;;  %v749_v34 = vld [vmem:[#allocation2 + $0x10] sm:$0x3]  ;;  %vm817_vm6 = vcmask 1024   ;;  %vm814_vm7 = vcmask 7168   ;;  %v2798_v48 = vcombine.low %v3831_v7, %v660_v10 }
  0x7a   : > { %v668_v14 = vadd.bf16 %v664_v12, %v660_v10  ;;  %v2795_v16 = vcombine.low %v669_v6, %v670_v9  ;;  %v747_v36 = vld [vmem:[#allocation2] sm:$0xff]  ;;  %v748_v41 = vld [vmem:[#allocation2 + $0x8] sm:$0xff]  ;;  %2990 = vmatprep.subr.bf16.mxu1 %v2799_v47  ;;  %p2802_p12 = scmp.ne.s32.totalorder %s3549_s24, 1 }
  0x7b   : > { %2991 = vmatpush3.bf16.msra.mxu1 %v2799_v47  ;;  %v798_v9 = vld [vmem:[#allocation3 + $0x10] sm:$0x3]  ;;  %v797_v10 = vld [vmem:[#allocation3 + $0x8] sm:$0xff]  ;;  %s4210_s29 = sld [smem:[#allocation33_spill]] (!%p2802_p12) }
  0x7c   : > { %v2794_v18 = vcombine.low %v667_v13, %v668_v14  ;;  %3134 = vmatprep.subr.msk.bf16.mxu0 %vm683_vm4, %v2795_v16  ;;  %v694_v19 = vsel %vm683_vm4, %v2795_v16, 0  ;;  %2992 = vmatprep.subr.bf16.mxu1 %v2798_v48  ;;  %v796_v14 = vld [vmem:[#allocation3] sm:$0xff] }
  0x7d   : > { %s4209_s14 = smov %s4208_s28  ;;  %v3836_v8 = vld [vmem:[%s4208_s28] sm:$0xff]  ;;  %2983 = vmatpush3.bf16.xpose.msra.mxu0 %v694_v19 }
  0x7e   : > { %v3845_v15 = vld [vmem:[%s4209_s14 + $0x8] sm:$0xff]  ;;  %3135 = vmatprep.subr.msk.bf16.mxu0 %vm683_vm4, %v2794_v18  ;;  %v691_v20 = vsel %vm683_vm4, %v2794_v18, 0  ;;  %v3857_v21 = vld [vmem:[%s4209_s14 + $0x10] sm:$0x3] }
  0x7f   : > { %v671_v17 = vpack.c.bf16 %v3845_v15, %v3836_v8  ;;  %v672_v22 = vpack.c.bf16 %v3857_v21, %v3857_v21  ;;  %2993 = vmatpush3.bf16.msra.mxu1 %v2798_v48 }
  0x81   : > { %2986 = vmatprep.mubr.msk.bf16.mxu0 %vm683_vm4, %v671_v17 }
  0x85   : > { %2985 = vmatpush3.bf16.xpose.msra.mxu0 %v691_v20 }
  0x8c   : > { %2987 = vmatmul.mubr.msk.bf16.vlgmr.msra.gmra.mxu0 %vm683_vm4, %v672_v22 }
 0x14c   : > { %v2988_v23 = vpop.f32.mrf.mxu0 }
 0x14d   : > { %v746_v24 = vmul.f32 0.17677669, %v2988_v23  ;;  %v821_v23 = vld [vmem:[#allocation4 + $0x10] sm:$0x3] }
 0x14e   : > { %v730_v25 = vpop.f32.mrf.mxu0 }
 0x14f   : > { %v744_v26 = vmul.f32 0.17677669, %v730_v25  ;;  %v757_v27 = vsel %vm756_vm5, %v746_v24, -inf  ;;  %v819_v25 = vld [vmem:[#allocation4] sm:$0xff] }
 0x150   : > { %758 = vmax.xlane.f32.xlu1 %v757_v27  ;;  %v2989_v28 = vpop.f32.mrf.mxu0 }
 0x151   : > { %v750_v29 = vsel %vm683_vm4, %v744_v26, -inf }
 0x152   : > { %751 = vmax.xlane.f32.xlu0 %v750_v29  ;;  %v733_v30 = vpop.f32.mrf.mxu0 }
 0x153   : > { %v745_v31 = vmul.f32 0.17677669, %v733_v30  ;;  %v820_v30 = vld [vmem:[#allocation4 + $0x8] sm:$0xff] }
 0x155   : > { %v753_v32 = vsel %vm683_vm4, %v745_v31, -inf }
 0x156   : > { %754 = vmax.xlane.f32.xlu0 %v753_v32 }
 0x1d9   : > { %v759_v35 = vpop.xlane.xlu1 %758 }
 0x1da   : > { %v762_v37 = vmax.f32 %v749_v34, %v759_v35 }
 0x1db   : > { %v752_v38 = vpop.xlane.xlu0 %751 }
 0x1dc   : > { %v765_v39 = vsub.f32 %v749_v34, %v762_v37  ;;  %916 = vst.msk [vmem:[#allocation2 + $0x10] sm:$0x3] %vm817_vm6, %v762_v37  ;;  %v760_v40 = vmax.f32 %v747_v36, %v752_v38 }
 0x1de   : > { %v763_v42 = vsub.f32 %v747_v36, %v760_v40  ;;  %914 = vst.msk [vmem:[#allocation2] sm:$0xff] %vm814_vm7, %v760_v40  ;;  %774 = vperm.xlu1 %3259, %v760_v40   ;;  %v770_v4 = vmul.f32 1.442695, %v765_v39 }
 0x1df   : > { %v755_v43 = vpop.xlane.xlu0 %754 }
 0x1e0   : > { %v766_v44 = vmul.f32 1.442695, %v763_v42  ;;  %v761_v45 = vmax.f32 %v748_v41, %v755_v43 }
 0x1e2   : > { %3261 = vpow2.f32 %v766_v44  ;;  %v764_v46 = vsub.f32 %v748_v41, %v761_v45  ;;  %915 = vst.msk [vmem:[#allocation2 + $0x8] sm:$0xff] %vm814_vm7, %v761_v45  ;;  %784 = vperm.xlu1 %3259, %v762_v37   ;;  %779 = vperm.xlu0 %3260, %v761_v45  }
 0x1e4   : > { %v768_v2 = vmul.f32 1.442695, %v764_v46 }
 0x1ef   : > { %v3262_v49 = vpop.eup %3261 }
 0x1f0   : > { %824 = vperm.xlu1 %3259, %v3262_v49   ;;  %v799_v19 = vmul.f32 %v3262_v49, %v796_v14 }
 0x259   : > { %v775_v50 = vpop.permute.xlu1 %774 }
 0x25a   : > { %v787_v51 = vsub.f32 %v744_v26, %v775_v50 }
 0x25c   : > { %v790_v52 = vmul.f32 1.442695, %v787_v51 }
 0x25d   : > { %v785_v53 = vpop.permute.xlu1 %784  ;;  %v780_v54 = vpop.permute.xlu0 %779 }
 0x25e   : > { %v789_v55 = vsub.f32 %v746_v24, %v785_v53  ;;  %v788_v56 = vsub.f32 %v745_v31, %v780_v54  ;;  %3263 = vpow2.f32 %v790_v52 }
 0x260   : > { %v794_v57 = vmul.f32 1.442695, %v789_v55  ;;  %v792_v58 = vmul.f32 1.442695, %v788_v56 }
 0x262   : > { %3265 = vpow2.f32 %v794_v57 }
 0x263   : > { %3267 = vpow2.f32 %v792_v58 }
 0x264   : > { %3269 = vpow2.f32 %v768_v2 }
 0x265   : > { %3271 = vpow2.f32 %v770_v4 }
 0x26b   : > { %v3264_v59 = vpop.eup %3263  ;;  %v825_v7 = vpop.permute.xlu1 %824 }
 0x26c   : > { %v802_v3 = vsel %vm683_vm4, %v3264_v59, 0.0  ;;  %v837_v28 = vmul.f32 %v825_v7, %v819_v25 }
 0x26f   : > { %v3266_v60 = vpop.eup %3265 }
 0x270   : > { %v3268_v61 = vpop.eup %3267  ;;  %v808_v62 = vsel %vm756_vm5, %v3266_v60, 0.0  ;;  %v841_v63 = vpack.c.bf16 %v3266_v60, %v3266_v60 }
 0x271   : > { %809 = vadd.xlane.f32.xlu1 %v808_v62  ;;  %v805_v0 = vsel %vm683_vm4, %v3268_v61, 0.0  ;;  %v840_v1 = vpack.c.bf16 %v3268_v61, %v3264_v59  ;;  %v3270_v5 = vpop.eup %3269 }
 0x272   : > { %806 = vadd.xlane.f32.xlu0 %v805_v0  ;;  %v3272_v6 = vpop.eup %3271  ;;  %v800_v13 = vmul.f32 %v3270_v5, %v797_v10 }
 0x273   : > { %2994 = vmatprep.mubr.msk.bf16.mxu1 %vm683_vm4, %v840_v1  ;;  %v801_v11 = vmul.f32 %v3272_v6, %v798_v9 }
 0x274   : > { %2995 = vmatmul.mubr.msk.bf16.vlgmr.msra.gmra.mxu1 %vm683_vm4, %v841_v63 }
 0x275   : > { %803 = vadd.xlane.f32.xlu1 %v802_v3 }
 0x286   : > { %829 = vperm.xlu1 %3259, %v3270_v5  }
 0x288   : > { %834 = vperm.xlu0 %3260, %v3272_v6  }
 0x2fa   : > { %v810_v12 = vpop.xlane.xlu1 %809 }
 0x2fb   : > { %v813_v16 = vadd.f32 %v810_v12, %v801_v11  ;;  %v807_v17 = vpop.xlane.xlu0 %806 }
 0x2fc   : > { %v812_v18 = vadd.f32 %v807_v17, %v800_v13 }
 0x2fd   : > { %818 = vst.msk [vmem:[#allocation3 + $0x10] sm:$0x3] %vm817_vm6, %v813_v16 }
 0x2fe   : > { %816 = vst.msk [vmem:[#allocation3 + $0x8] sm:$0xff] %vm814_vm7, %v812_v18  ;;  %v804_v20 = vpop.xlane.xlu1 %803 }
 0x2ff   : > { %v811_v22 = vadd.f32 %v804_v20, %v799_v19 }
 0x301   : > { %815 = vst.msk [vmem:[#allocation3] sm:$0xff] %vm814_vm7, %v811_v22 }
 0x302   : > { %v830_v31 = vpop.permute.xlu1 %829 }
 0x303   : > { %v835_v24 = vpop.permute.xlu0 %834  ;;  %v838_v35 = vmul.f32 %v830_v31, %v820_v30 }
 0x304   : > { %v839_v26 = vmul.f32 %v835_v24, %v821_v23 }
 0x334   : > { %v2996_v27 = vpop.f32.mrf.mxu1 }
 0x335   : > { %v910_v29 = vadd.f32 %v2996_v27, %v839_v26 }
 0x336   : > { %v894_v32 = vpop.f32.mrf.mxu1 }
 0x337   : > { %913 = vst.msk [vmem:[#allocation4 + $0x10] sm:$0x3] %vm756_vm5, %v910_v29  ;;  %v908_v33 = vadd.f32 %v894_v32, %v837_v28 }
 0x338   : > { %v2997_v34 = vpop.f32.mrf.mxu1 }
 0x339   : > { %911 = vst.msk [vmem:[#allocation4] sm:$0xff] %vm683_vm4, %v908_v33  ;;  %920 = sbr.rel (%p2802_p12) target bundleno = 2644 (0xa54), region = 104 }
 0x33a   : > { %v897_v36 = vpop.f32.mrf.mxu1 }
 0x33b   : > { %v909_v37 = vadd.f32 %v897_v36, %v838_v35 }
 0x33d   : > { %912 = vst.msk [vmem:[#allocation4 + $0x8] sm:$0xff] %vm683_vm4, %v909_v37 }
 0x33e   : > { %v924_v38 = vld [vmem:[#allocation3] sm:$0xff]  ;;  %v926_v39 = vld [vmem:[#allocation3 + $0x10] sm:$0x3]  ;;  %v925_v40 = vld [vmem:[#allocation3 + $0x8] sm:$0xff]  ;;  %v3578_v41 = vmov 0   ;;  %v3579_v43 = vmov 0.0  }
 0x33f   : > { %3273 = vset.pattern.permute.xlu0 %v3578_v41  ;;  %3351 = vrcp.f32 %v924_v38  ;;  %3274 = vset.pattern.permute.xlu1 %v3578_v41  ;;  %v3275_v42 = vld [vmem:[%s4149_s3 + $0x8] sm:$0xff]   ;;  %v3276_v47 = vld [vmem:[%s4149_s3] sm:$0xff]   ;;  %vm3580_vm8 = vmmov 0   ;;  %v3279_v48 = vld [vmem:[#allocation8 + $0x8] sm:$0xff]   ;;  %vm2380_vm9 = vsmask.f32 4352 }
 0x340   : > { %3353 = vrcp.f32 %v926_v39  ;;  %2998 = vmatprep.subr.bf16.mxu0 %v3579_v43  ;;  %3006 = vmatprep.subr.bf16.mxu1 %v3579_v43  ;;  %v921_v50 = vld [vmem:[#allocation4] sm:$0xff]  ;;  %v3277_v57 = vld [vmem:[%s4149_s3 + $0x18] sm:$0xff]   ;;  %v960_v0 = vld [vmem:[#allocation5] sm:$0x1]  ;;  %vm2591_vm11 = vcmask 31744   ;;  %vm2593_vm12 = vcmask 26624  }
 0x341   : > { %3355 = vrcp.f32 %v925_v40  ;;  %2999 = vmatpush3.bf16.msra.mxu0 %v3275_v42  ;;  %3002 = vmatprep.mubr.msk.bf16.mxu0 %vm3580_vm8, %v3579_v43  ;;  %v3278_v60 = vld [vmem:[%s4149_s3 + $0x10] sm:$0xff]   ;;  %v3281_v6 = vld [vmem:[#allocation8 + $0x18] sm:$0xff]   ;;  %v3282_v12 = vld [vmem:[#allocation8 + $0x10] sm:$0xff]  }
 0x342   : > { %3000 = vmatprep.subr.bf16.mxu0 %v3579_v43  ;;  %3010 = vmatprep.mubr.msk.bf16.mxu1 %vm3580_vm8, %v3579_v43  ;;  %v3280_v63 = vld [vmem:[#allocation8] sm:$0xff]   ;;  %v1089_v10 = vld [vmem:[#allocation5 + $0x1] sm:$0x1]  ;;  %v3284_v22 = vld [vmem:[%s4149_s3 + $0x20] sm:$0xff]  }
 0x343   : > { %3007 = vmatpush3.bf16.msra.mxu1 %v3279_v48  ;;  %v3283_v18 = vld [vmem:[%s4149_s3 + $0x28] sm:$0xff]   ;;  %v3285_v23 = vld [vmem:[%s4149_s3 + $0x38] sm:$0xff]   ;;  %v3286_v25 = vld [vmem:[%s4149_s3 + $0x30] sm:$0xff]  }
 0x344   : > { %3008 = vmatprep.subr.bf16.mxu1 %v3579_v43  ;;  %v922_v51 = vld [vmem:[#allocation4 + $0x8] sm:$0xff]  ;;  %v3292_v29 = vld [vmem:[#allocation11 + $0x24] ss:$8 sps:$4 sm:$0xff]   ;;  %v3290_v30 = vld [vmem:[#allocation11 + $0x20] ss:$8 sps:$4 sm:$0xff]  }
 0x345   : > { %3001 = vmatpush3.bf16.msra.mxu0 %v3276_v47  ;;  %v3289_v27 = vld [vmem:[#allocation11 + $0x34] ss:$8 sps:$4 sm:$0xff]   ;;  %v3287_v28 = vld [vmem:[#allocation11 + $0x30] ss:$8 sps:$4 sm:$0xff]   ;;  %v3294_v48 = vld [vmem:[#allocation8 + $0x20] sm:$0xff]  }
 0x346   : > { %3014 = vmatprep.subr.bf16.mxu0 %v3579_v43  ;;  %v1154_v35 = vld [vmem:[#allocation10 + $0x1] sm:$0x1]  ;;  %v3293_v42 = vld [vmem:[#allocation8 + $0x28] sm:$0xff]  }
 0x347   : > { %3009 = vmatpush3.bf16.msra.mxu1 %v3280_v63 }
 0x348   : > { %3022 = vmatprep.subr.bf16.mxu1 %v3579_v43 }
 0x34c   : > { %v3352_v44 = vpop.eup %3351 }
 0x34d   : > { %v3354_v45 = vpop.eup %3353  ;;  %935 = vperm.xlu0 %3273, %v3352_v44  }
 0x34e   : > { %v3356_v46 = vpop.eup %3355  ;;  %945 = vperm.xlu1 %3274, %v3354_v45  }
 0x351   : > { %940 = vperm.xlu0 %3273, %v3356_v46   ;;  %v1286_v46 = vld [vmem:[#allocation5 + $0x2] sm:$0x1] }
 0x3c8   : > { %v936_v49 = vpop.permute.xlu0 %935 }
 0x3c9   : > { %v948_v52 = vmul.f32 %v936_v49, %v921_v50 }
 0x3cb   : > { %v951_v55 = vadd.f32 %v948_v52, %v3836_v8 }
 0x3cc   : > { %v941_v53 = vpop.permute.xlu0 %940 }
 0x3cd   : > { %v949_v54 = vmul.f32 %v941_v53, %v922_v51  ;;  %v3295_v53 = vld [vmem:[#allocation8 + $0x38] sm:$0xff]  }
 0x3cf   : > { %v952_v56 = vadd.f32 %v949_v54, %v3845_v15 }
 0x3d1   : > { %v3905_v58 = vpack.c.bf16 %v952_v56, %v951_v55  ;;  %v1419_v56 = vld [vmem:[#allocation5 + $0x3] sm:$0x1] }
 0x3d3   : > { %3003 = vmatmul.mubr.msk.bf16.vlgmr.msra.gmra.mxu0 %vm683_vm4, %v3905_v58  ;;  %v3910_v59 = vshrl.u32 %v3905_v58, 16  ;;  %v2382_v8 = vshll.u32 %v3905_v58, 16  ;;  %v1288_v24 = vrot.slane %v3905_v58, 1 }
 0x3d4   : > { %3015 = vmatpush3.bf16.msra.mxu0 %v3277_v57  ;;  %3018 = vmatprep.mubr.msk.bf16.mxu0 %vm3580_vm8, %v3579_v43 }
 0x3d5   : > { %3016 = vmatprep.subr.bf16.mxu0 %v3579_v43  ;;  %v2381_v15 = vrot.slane %v3910_v59, 3  ;;  %v2384_v61 = vrot.slane %v2382_v8, 4  ;;  %v1420_v26 = vrot.slane %v3910_v59, 1 }
 0x3d7   : > { %v3920_v62 = vor.u32 %v2384_v61, %v2381_v15 }
 0x3d8   : > { %3017 = vmatpush3.bf16.msra.mxu0 %v3278_v60  ;;  %v3296_v60 = vld [vmem:[#allocation8 + $0x30] sm:$0xff]  }
 0x3d9   : > { %1252 = vmatprep.subr.bf16.mxu0 %v3289_v27 }
 0x3db   : > { %3019 = vmatmul.mubr.msk.bf16.vlgmr.msra.gmra.mxu0 %vm683_vm4, %v3910_v59 }
 0x3dc   : > { %1272 = vmatprep.mubr.bf16.mxu0 %v3578_v41  ;;  %1253 = vmatpush1.bf16.msra.mxu0 %v3287_v28  ;;  %v3307_v28 = vld [vmem:[#allocation8 + $0x48] sm:$0xff]  }
 0x3dd   : > { %1254 = vmatprep.subr.bf16.mxu0 %v3292_v29 }
 0x3e0   : > { %1255 = vmatpush1.bf16.msra.mxu0 %v3290_v30 }
 0x3e1   : > { %3038 = vmatprep.subr.bf16.mxu0 %v3579_v43 }
 0x493   : > { %v1010_v1 = vpop.f32.mrf.mxu0 }
 0x494   : > { %v1011_v2 = vadd.f32 %v1010_v1, %v960_v0  ;;  %v3297_v0 = vld [vmem:[%s4149_s3 + $0x48] sm:$0xff]  }
 0x495   : > { %v3004_v3 = vpop.f32.mrf.mxu0 }
 0x496   : > { %v1016_v4 = vmax.f32 %v1011_v2, 0.0  ;;  %v3298_v3 = vld [vmem:[%s4149_s3 + $0x40] sm:$0xff]  }
 0x497   : > { %v1013_v5 = vpop.f32.mrf.mxu0 }
 0x498   : > { %v1017_v7 = vpack.c.bf16 %v1016_v4, %v1016_v4  ;;  %v3299_v4 = vld [vmem:[%s4149_s3 + $0x58] sm:$0xff]   ;;  %v1616_v5 = vrot.slane %v3905_v58, 2 }
 0x499   : > { %v3005_v9 = vpop.f32.mrf.mxu0 }
 0x49a   : > { %3011 = vmatmul.mubr.msk.bf16.vlgmr.msra.gmra.mxu1 %vm683_vm4, %v1017_v7  ;;  %v1748_v7 = vrot.slane %v3910_v59, 2  ;;  %v3303_v9 = vld [vmem:[#allocation11 + $0x74] ss:$8 sps:$4 sm:$0xff]  }
 0x49b   : > { %3023 = vmatpush3.bf16.msra.mxu1 %v3281_v6  ;;  %v1141_v11 = vpop.f32.mrf.mxu0  ;;  %3026 = vmatprep.mubr.msk.bf16.mxu1 %vm3580_vm8, %v3579_v43  ;;  %v3300_v6 = vld [vmem:[%s4149_s3 + $0x50] sm:$0xff]  }
 0x49c   : > { %v1142_v13 = vadd.f32 %v1141_v11, %v1089_v10  ;;  %3024 = vmatprep.subr.bf16.mxu1 %v3579_v43  ;;  %v3301_v10 = vld [vmem:[#allocation11 + $0x70] ss:$8 sps:$4 sm:$0xff]   ;;  %v3306_v11 = vld [vmem:[#allocation11 + $0x64] ss:$8 sps:$4 sm:$0xff]  }
 0x49d   : > { %v3020_v14 = vpop.f32.mrf.mxu0 }
 0x49e   : > { %v1147_v16 = vmax.f32 %v1142_v13, 0.0 }
 0x49f   : > { %3025 = vmatpush3.bf16.msra.mxu1 %v3282_v12  ;;  %v1144_v17 = vpop.f32.mrf.mxu0  ;;  %v3304_v12 = vld [vmem:[#allocation11 + $0x60] ss:$8 sps:$4 sm:$0xff]  }
 0x4a0   : > { %v1148_v19 = vpack.c.bf16 %v1147_v16, %v1147_v16  ;;  %3030 = vmatprep.subr.bf16.mxu1 %v3579_v43 }
 0x4a1   : > { %v3021_v20 = vpop.f32.mrf.mxu0 }
 0x4a2   : > { %3027 = vmatmul.mubr.msk.bf16.vlgmr.msra.gmra.mxu1 %vm683_vm4, %v1148_v19 }
 0x4a3   : > { %3031 = vmatpush3.bf16.msra.mxu1 %v3283_v18  ;;  %3034 = vmatprep.mubr.msk.bf16.mxu1 %vm3580_vm8, %v3579_v43 }
 0x4a4   : > { %3032 = vmatprep.subr.bf16.mxu1 %v3579_v43 }
 0x4a7   : > { %3033 = vmatpush3.bf16.msra.mxu1 %v3284_v22  ;;  %v1483_v22 = vld [vmem:[#allocation10 + $0x3] sm:$0x1] }
 0x4a8   : > { %3046 = vmatprep.subr.bf16.mxu1 %v3579_v43 }
 0x4aa   : > { %3035 = vmatmul.mubr.msk.bf16.vlgmr.msra.gmra.mxu1 %vm683_vm4, %v1288_v24 }
 0x4ab   : > { %3047 = vmatpush3.bf16.msra.mxu1 %v3285_v23  ;;  %3050 = vmatprep.mubr.msk.bf16.mxu1 %vm3580_vm8, %v3579_v43 }
 0x4ac   : > { %3048 = vmatprep.subr.bf16.mxu1 %v3579_v43 }
 0x4af   : > { %3049 = vmatpush3.bf16.msra.mxu1 %v3286_v25 }
 0x4b0   : > { %1581 = vmatprep.subr.bf16.mxu1 %v3303_v9 }
 0x4b2   : > { %3051 = vmatmul.mubr.msk.bf16.vlgmr.msra.gmra.mxu1 %vm683_vm4, %v1420_v26 }
 0x4b3   : > { %1601 = vmatprep.mubr.bf16.mxu1 %v3578_v41  ;;  %1582 = vmatpush1.bf16.msra.mxu1 %v3301_v10 }
 0x4b4   : > { %1583 = vmatprep.subr.bf16.mxu1 %v3306_v11  ;;  %v3319_v11 = vld [vmem:[#allocation8 + $0x68] sm:$0xff]  }
 0x4b7   : > { %1584 = vmatpush1.bf16.msra.mxu1 %v3304_v12 }
 0x4b8   : > { %3070 = vmatprep.subr.bf16.mxu1 %v3579_v43 }
 0x55a   : > { %v3957_v31 = vpop.f32.mrf.mxu1 }
 0x55c   : > { %v3012_v32 = vpop.f32.mrf.mxu1 }
 0x55d   : > { %v1615_v32 = vld [vmem:[#allocation5 + $0x4] sm:$0x1] }
 0x55e   : > { %v1075_v33 = vpop.f32.mrf.mxu1 }
 0x560   : > { %v3013_v34 = vpop.f32.mrf.mxu1 }
 0x561   : > { %v3308_v34 = vld [vmem:[#allocation8 + $0x40] sm:$0xff]  }
 0x562   : > { %v1204_v36 = vpop.f32.mrf.mxu1 }
 0x563   : > { %v1205_v37 = vadd.f32 %v1204_v36, %v1154_v35 }
 0x564   : > { %v3028_v38 = vpop.f32.mrf.mxu1 }
 0x565   : > { %v1210_v39 = vmax.f32 %v1205_v37, 0.0 }
 0x566   : > { %v1207_v40 = vpop.f32.mrf.mxu1 }
 0x567   : > { %v1211_v44 = vpack.c.bf16 %v1210_v39, %v1210_v39  ;;  %v3309_v39 = vld [vmem:[#allocation8 + $0x58] sm:$0xff]  }
 0x568   : > { %v3029_v45 = vpop.f32.mrf.mxu1 }
 0x569   : > { %2823 = vmatmul.mubr.msk.bf16.vlgmr.msra.gmra.mxu0 %vm683_vm4, %v1211_v44  ;;  %v1747_v44 = vld [vmem:[#allocation5 + $0x5] sm:$0x1] }
 0x56a   : > { %3039 = vmatpush3.bf16.msra.mxu0 %v3293_v42  ;;  %v1338_v47 = vpop.f32.mrf.mxu1  ;;  %3042 = vmatprep.mubr.msk.bf16.mxu0 %vm3580_vm8, %v3579_v43 }
 0x56b   : > { %v1339_v49 = vadd.f32 %v1338_v47, %v1286_v46  ;;  %3040 = vmatprep.subr.bf16.mxu0 %v3579_v43  ;;  %v3310_v46 = vld [vmem:[#allocation8 + $0x50] sm:$0xff]  }
 0x56c   : > { %v3036_v50 = vpop.f32.mrf.mxu1 }
 0x56d   : > { %v1344_v51 = vmax.f32 %v1339_v49, 0.0 }
 0x56e   : > { %3041 = vmatpush3.bf16.msra.mxu0 %v3294_v48  ;;  %v1341_v52 = vpop.f32.mrf.mxu1 }
 0x56f   : > { %v1345_v54 = vpack.c.bf16 %v1344_v51, %v1344_v51  ;;  %3054 = vmatprep.subr.bf16.mxu0 %v3579_v43  ;;  %v3311_v51 = vld [vmem:[%s4149_s3 + $0x68] sm:$0xff]  }
 0x570   : > { %v3037_v55 = vpop.f32.mrf.mxu1 }
 0x571   : > { %3043 = vmatmul.mubr.msk.bf16.vlgmr.msra.gmra.mxu0 %vm683_vm4, %v1345_v54  ;;  %v3312_v54 = vld [vmem:[%s4149_s3 + $0x60] sm:$0xff]   ;;  %v1944_v55 = vrot.slane %v3905_v58, 3 }
 0x572   : > { %3055 = vmatpush3.bf16.msra.mxu0 %v3295_v53  ;;  %v1470_v57 = vpop.f32.mrf.mxu1  ;;  %3058 = vmatprep.mubr.msk.bf16.mxu0 %vm3580_vm8, %v3579_v43 }
 0x573   : > { %v1471_v8 = vadd.f32 %v1470_v57, %v1419_v56  ;;  %3056 = vmatprep.subr.bf16.mxu0 %v3579_v43  ;;  %v3315_v56 = vld [vmem:[#allocation11 + $0xb4] ss:$8 sps:$4 sm:$0xff]   ;;  %v3313_v57 = vld [vmem:[#allocation11 + $0xb0] ss:$8 sps:$4 sm:$0xff]  }
 0x574   : > { %v3052_v15 = vpop.f32.mrf.mxu1 }
 0x575   : > { %v1476_v61 = vmax.f32 %v1471_v8, 0.0  ;;  %v3316_v8 = vld [vmem:[#allocation11 + $0xa0] ss:$8 sps:$4 sm:$0xff]  }
 0x576   : > { %3057 = vmatpush3.bf16.msra.mxu0 %v3296_v60  ;;  %v1473_v63 = vpop.f32.mrf.mxu1  ;;  %v3318_v60 = vld [vmem:[#allocation11 + $0xa4] ss:$8 sps:$4 sm:$0xff]  }
 0x577   : > { %v1477_v1 = vpack.c.bf16 %v1476_v61, %v1476_v61  ;;  %3062 = vmatprep.subr.bf16.mxu0 %v3579_v43 }
 0x578   : > { %v3053_v2 = vpop.f32.mrf.mxu1 }
 0x579   : > { %3059 = vmatmul.mubr.msk.bf16.vlgmr.msra.gmra.mxu0 %vm683_vm4, %v1477_v1 }
 0x57a   : > { %3063 = vmatpush3.bf16.msra.mxu0 %v3297_v0  ;;  %3066 = vmatprep.mubr.msk.bf16.mxu0 %vm3580_vm8, %v3579_v43 }
 0x57b   : > { %3064 = vmatprep.subr.bf16.mxu0 %v3579_v43 }
 0x57e   : > { %3065 = vmatpush3.bf16.msra.mxu0 %v3298_v3 }
 0x57f   : > { %3078 = vmatprep.subr.bf16.mxu0 %v3579_v43 }
 0x581   : > { %3067 = vmatmul.mubr.msk.bf16.vlgmr.msra.gmra.mxu0 %vm683_vm4, %v1616_v5 }
 0x582   : > { %3079 = vmatpush3.bf16.msra.mxu0 %v3299_v4  ;;  %3082 = vmatprep.mubr.msk.bf16.mxu0 %vm3580_vm8, %v3579_v43  ;;  %v1811_v4 = vld [vmem:[#allocation10 + $0x5] sm:$0x1] }
 0x583   : > { %3080 = vmatprep.subr.bf16.mxu0 %v3579_v43 }
 0x586   : > { %3081 = vmatpush3.bf16.msra.mxu0 %v3300_v6 }
 0x587   : > { %1909 = vmatprep.subr.bf16.mxu0 %v3315_v56 }
 0x589   : > { %3083 = vmatmul.mubr.msk.bf16.vlgmr.msra.gmra.mxu0 %vm683_vm4, %v1748_v7 }
 0x58a   : > { %1929 = vmatprep.mubr.bf16.mxu0 %v3578_v41  ;;  %1910 = vmatpush1.bf16.msra.mxu0 %v3313_v57  ;;  %v2007_v57 = vld [vmem:[#allocation10 + $0x6] sm:$0x1] }
 0x58b   : > { %1911 = vmatprep.subr.bf16.mxu0 %v3318_v60 }
 0x58e   : > { %1912 = vmatpush1.bf16.msra.mxu0 %v3316_v8 }
 0x58f   : > { %3102 = vmatprep.subr.bf16.mxu0 %v3579_v43 }
 0x629   : > { %v3995_v13 = vpop.f32.mrf.mxu0 }
 0x62b   : > { %v3997_v14 = vpop.f32.mrf.mxu0 }
 0x62d   : > { %v1278_v16 = vpop.f32.mrf.mxu0 }
 0x62f   : > { %v1279_v59 = vpop.f32.mrf.mxu0 }
 0x630   : > { %v1943_v59 = vld [vmem:[#allocation5 + $0x6] sm:$0x1] }
 0x631   : > { %v3999_v17 = vpop.f32.mrf.mxu0 }
 0x633   : > { %v3044_v18 = vpop.f32.mrf.mxu0 }
 0x635   : > { %v1404_v19 = vpop.f32.mrf.mxu0 }
 0x636   : > { %v3320_v19 = vld [vmem:[#allocation8 + $0x60] sm:$0xff]  }
 0x637   : > { %v3045_v20 = vpop.f32.mrf.mxu0 }
 0x639   : > { %v1533_v23 = vpop.f32.mrf.mxu0 }
 0x63a   : > { %v1534_v24 = vadd.f32 %v1533_v23, %v1483_v22  ;;  %v3323_v22 = vld [vmem:[#allocation11 + $0x14] ss:$8 sps:$4 sm:$0xff]   ;;  %v1022_v23 = vld [vmem:[#allocation10] sm:$0x1] }
 0x63b   : > { %v3060_v25 = vpop.f32.mrf.mxu0 }
 0x63c   : > { %v1539_v26 = vmax.f32 %v1534_v24, 0.0 }
 0x63d   : > { %v1536_v27 = vpop.f32.mrf.mxu0 }
 0x63e   : > { %v1540_v29 = vpack.c.bf16 %v1539_v26, %v1539_v26  ;;  %v3321_v27 = vld [vmem:[#allocation11 + $0x10] ss:$8 sps:$4 sm:$0xff]  }
 0x63f   : > { %v3061_v30 = vpop.f32.mrf.mxu0 }
 0x640   : > { %2848 = vmatmul.mubr.msk.bf16.vlgmr.msra.gmra.mxu1 %vm683_vm4, %v1540_v29  ;;  %v3326_v30 = vld [vmem:[#allocation11 + $0x4] ss:$8 sps:$4 sm:$0xff]  }
 0x641   : > { %3071 = vmatpush3.bf16.msra.mxu1 %v3307_v28  ;;  %v1666_v33 = vpop.f32.mrf.mxu0  ;;  %3074 = vmatprep.mubr.msk.bf16.mxu1 %vm3580_vm8, %v3579_v43  ;;  %v1073_v28 = vadd.f32 %v3957_v31, %v1022_v23  ;;  %v3332_v31 = vld [vmem:[#allocation11 + $0x84] ss:$8 sps:$4 sm:$0xff]  }
 0x642   : > { %v1667_v35 = vadd.f32 %v1666_v33, %v1615_v32  ;;  %3072 = vmatprep.subr.bf16.mxu1 %v3579_v43  ;;  %v3324_v33 = vld [vmem:[#allocation11] ss:$8 sps:$4 sm:$0xff]  }
 0x643   : > { %v3068_v36 = vpop.f32.mrf.mxu0 }
 0x644   : > { %v1672_v37 = vmax.f32 %v1667_v35, 0.0  ;;  %v3329_v35 = vld [vmem:[#allocation11 + $0x94] ss:$8 sps:$4 sm:$0xff]  }
 0x645   : > { %3073 = vmatpush3.bf16.msra.mxu1 %v3308_v34  ;;  %v1669_v38 = vpop.f32.mrf.mxu0  ;;  %v1078_v34 = vmax.f32 %v1073_v28, 0.0  ;;  %v1679_v36 = vld [vmem:[#allocation10 + $0x4] sm:$0x1] }
 0x646   : > { %v1673_v40 = vpack.c.bf16 %v1672_v37, %v1672_v37  ;;  %3086 = vmatprep.subr.bf16.mxu1 %v3579_v43  ;;  %v3327_v37 = vld [vmem:[#allocation11 + $0x90] ss:$8 sps:$4 sm:$0xff]  }
 0x647   : > { %v3069_v42 = vpop.f32.mrf.mxu0  ;;  %v1079_v38 = vpack.c.bf16 %v1078_v34, %v1078_v34  ;;  %v3348_v34 = vld [vmem:[%s4157_s11] sm:$0xff]  }
 0x648   : > { %3075 = vmatmul.mubr.msk.bf16.vlgmr.msra.gmra.mxu1 %vm683_vm4, %v1673_v40  ;;  %v3330_v40 = vld [vmem:[#allocation11 + $0x80] ss:$8 sps:$4 sm:$0xff]  }
 0x649   : > { %3087 = vmatpush3.bf16.msra.mxu1 %v3309_v39  ;;  %v1798_v45 = vpop.f32.mrf.mxu0  ;;  %3090 = vmatprep.mubr.msk.bf16.mxu1 %vm3580_vm8, %v3579_v43 }
 0x64a   : > { %v1799_v47 = vadd.f32 %v1798_v45, %v1747_v44  ;;  %3088 = vmatprep.subr.bf16.mxu1 %v3579_v43  ;;  %v3335_v45 = vld [vmem:[#allocation11 + $0xd4] ss:$8 sps:$4 sm:$0xff]  }
 0x64b   : > { %v3084_v48 = vpop.f32.mrf.mxu0 }
 0x64c   : > { %v1804_v49 = vmax.f32 %v1799_v47, 0.0  ;;  %v3338_v47 = vld [vmem:[#allocation11 + $0xc4] ss:$8 sps:$4 sm:$0xff]   ;;  %v3336_v48 = vld [vmem:[#allocation11 + $0xc0] ss:$8 sps:$4 sm:$0xff]  }
 0x64d   : > { %3089 = vmatpush3.bf16.msra.mxu1 %v3310_v46  ;;  %v1801_v50 = vpop.f32.mrf.mxu0  ;;  %v3333_v46 = vld [vmem:[#allocation11 + $0xd0] ss:$8 sps:$4 sm:$0xff]  }
 0x64e   : > { %v1805_v52 = vpack.c.bf16 %v1804_v49, %v1804_v49  ;;  %3094 = vmatprep.subr.bf16.mxu1 %v3579_v43  ;;  %v3341_v49 = vld [vmem:[#allocation11 + $0x54] ss:$8 sps:$4 sm:$0xff]  }
 0x64f   : > { %v3085_v53 = vpop.f32.mrf.mxu0 }
 0x650   : > { %3091 = vmatmul.mubr.msk.bf16.vlgmr.msra.gmra.mxu1 %vm683_vm4, %v1805_v52  ;;  %v946_v52 = vpop.permute.xlu1 %945  ;;  %v923_v53 = vld [vmem:[#allocation4 + $0x10] sm:$0x3] }
 0x651   : > { %3095 = vmatpush3.bf16.msra.mxu1 %v3311_v51  ;;  %3098 = vmatprep.mubr.msk.bf16.mxu1 %vm3580_vm8, %v3579_v43 }
 0x652   : > { %3096 = vmatprep.subr.bf16.mxu1 %v3579_v43 }
 0x655   : > { %3097 = vmatpush3.bf16.msra.mxu1 %v3312_v54 }
 0x656   : > { %2105 = vmatprep.subr.bf16.mxu1 %v3335_v45 }
 0x658   : > { %3099 = vmatmul.mubr.msk.bf16.vlgmr.msra.gmra.mxu1 %vm683_vm4, %v1944_v55  ;;  %v950_v55 = vmul.f32 %v946_v52, %v923_v53 }
 0x659   : > { %2125 = vmatprep.mubr.bf16.mxu1 %v3578_v41  ;;  %2106 = vmatpush1.bf16.msra.mxu1 %v3333_v46  ;;  %v2332_v46 = vld [vmem:[%s4154_s8] sm:$0x3] }
 0x65a   : > { %2107 = vmatprep.subr.bf16.mxu1 %v3338_v47  ;;  %v3581_v47 = vmov 1966171168  }
 0x65d   : > { %2108 = vmatpush1.bf16.msra.mxu1 %v3336_v48  ;;  %v2350_v48 = vunpack.c.l.s4 %v3581_v47 }
 0x65e   : > { %2233 = vmatprep.subr.bf16.mxu1 %v3341_v49 }
 0x700   : > { %v4025_v15 = vpop.f32.mrf.mxu1 }
 0x702   : > { %v4027_v61 = vpop.f32.mrf.mxu1 }
 0x704   : > { %v1607_v63 = vpop.f32.mrf.mxu1 }
 0x705   : > { %v953_v63 = vadd.f32 %v950_v55, %v3857_v21 }
 0x706   : > { %v1608_v58 = vpop.f32.mrf.mxu1 }
 0x707   : > { %v1351_v58 = vld [vmem:[#allocation10 + $0x2] sm:$0x1] }
 0x708   : > { %v1729_v0 = vpop.f32.mrf.mxu1 }
 0x709   : > { %v1730_v39 = vadd.f32 %v1729_v0, %v1679_v36  ;;  %v2334_v36 = vlaneseq }
 0x70a   : > { %v3076_v1 = vpop.f32.mrf.mxu1 }
 0x70b   : > { %v1735_v42 = vmax.f32 %v1730_v39, 0.0  ;;  %vm2366_vm10 = vcmp.lt.s32.totalorder %v2334_v36, 256 }
 0x70c   : > { %v1732_v2 = vpop.f32.mrf.mxu1 }
 0x70d   : > { %v1736_v44 = vpack.c.bf16 %v1735_v42, %v1735_v42 }
 0x70e   : > { %v3077_v3 = vpop.f32.mrf.mxu1 }
 0x70f   : > { %v3339_v3 = vld [vmem:[#allocation11 + $0x50] ss:$8 sps:$4 sm:$0xff]  }
 0x710   : > { %v1861_v5 = vpop.f32.mrf.mxu1 }
 0x711   : > { %v1862_v6 = vadd.f32 %v1861_v5, %v1811_v4  ;;  %v1402_v4 = vadd.f32 %v3999_v17, %v1351_v58  ;;  %v3345_v17 = vld [vmem:[%s4155_s9 + $0x8] sm:$0xff]   ;;  %v2904_v58 = vld [vmem:[%s4156_s10] ss:$0 sm:$0xff] }
 0x712   : > { %v3092_v7 = vpop.f32.mrf.mxu1 }
 0x713   : > { %v1867_v9 = vmax.f32 %v1862_v6, 0.0  ;;  %v3344_v6 = vld [vmem:[#allocation11 + $0x44] ss:$8 sps:$4 sm:$0xff]   ;;  %v955_v7 = vpack.c.bf16 %v953_v63, %v953_v63 }
 0x714   : > { %v1864_v10 = vpop.f32.mrf.mxu1 }
 0x715   : > { %v1868_v12 = vpack.c.bf16 %v1867_v9, %v1867_v9  ;;  %v2387_v21 = vshrl.u32 %v955_v7, 16 }
 0x716   : > { %v3093_v16 = vpop.f32.mrf.mxu1 }
 0x717   : > { %2873 = vmatmul.mubr.msk.bf16.vlgmr.msra.gmra.mxu0 %vm683_vm4, %v1868_v12  ;;  %v1407_v12 = vmax.f32 %v1402_v4, 0.0  ;;  %v2390_v16 = vshll.u32 %v955_v7, 16 }
 0x718   : > { %3103 = vmatpush3.bf16.msra.mxu0 %v3319_v11  ;;  %v1994_v18 = vpop.f32.mrf.mxu1  ;;  %3106 = vmatprep.mubr.msk.bf16.mxu0 %vm3580_vm8, %v3579_v43  ;;  %v3342_v11 = vld [vmem:[#allocation11 + $0x40] ss:$8 sps:$4 sm:$0xff]  }
 0x719   : > { %v1995_v20 = vadd.f32 %v1994_v18, %v1943_v59  ;;  %3104 = vmatprep.subr.bf16.mxu0 %v3579_v43 }
 0x71a   : > { %v3100_v24 = vpop.f32.mrf.mxu1 }
 0x71b   : > { %v2000_v25 = vmax.f32 %v1995_v20, 0.0  ;;  %v2389_v20 = vrot.slane %v2387_v21, 3  ;;  %v3346_v24 = vld [vmem:[%s4155_s9] sm:$0xff]  }
 0x71c   : > { %3105 = vmatpush3.bf16.msra.mxu0 %v3320_v19  ;;  %v1997_v26 = vpop.f32.mrf.mxu1  ;;  %v1408_v19 = vpack.c.bf16 %v1407_v12, %v1407_v12 }
 0x71d   : > { %v2001_v29 = vpack.c.bf16 %v2000_v25, %v2000_v25  ;;  %2169 = vmatprep.subr.bf16.mxu0 %v3323_v22  ;;  %v2392_v22 = vrot.slane %v2390_v16, 4  ;;  %v3349_v16 = vld [vmem:[%s4159_s13 + $0x8] sm:$0xff]  }
 0x71e   : > { %v3101_v32 = vpop.f32.mrf.mxu1 }
 0x71f   : > { %3107 = vmatmul.mubr.msk.bf16.vlgmr.msra.gmra.mxu0 %vm683_vm4, %v2001_v29  ;;  %v2393_v26 = vor.u32 %v2392_v22, %v2389_v20 }
 0x720   : > { %2170 = vmatpush1.bf16.msra.mxu0 %v3321_v27  ;;  %2189 = vmatprep.mubr.bf16.mxu0 %v3578_v41 }
 0x721   : > { %2171 = vmatprep.subr.bf16.mxu0 %v3326_v30  ;;  %v2394_v32 = vsel %vm2380_vm9, %v3920_v62, %v2393_v26  ;;  %v2912_v26 = vld [vmem:[%s4210_s29] ss:$0 sm:$0xff] }
 0x724   : > { %2172 = vmatpush1.bf16.msra.mxu0 %v3324_v33  ;;  %v3347_v33 = vld [vmem:[%s4157_s11 + $0x8] sm:$0xff]  }
 0x725   : > { %2297 = vmatprep.subr.bf16.mxu0 %v3329_v35 }
 0x727   : > { %2893 = vmatmul.mubr.msk.bf16.vlgmr.msra.gmra.mxu0 %vm683_vm4, %v1079_v38  ;;  %v2335_v38 = vshrl.u32 %v2334_v36, 7 }
 0x728   : > { %2298 = vmatpush1.bf16.msra.mxu0 %v3327_v37  ;;  %2317 = vmatprep.mubr.bf16.mxu0 %v3578_v41 }
 0x729   : > { %2299 = vmatprep.subr.bf16.mxu0 %v3332_v31  ;;  %v2340_v42 = vsub.s32 1, %v2335_v38 }
 0x72b   : > { %v2341_v55 = vrot.slane %v2332_v46, %v2340_v42 }
 0x72c   : > { %2300 = vmatpush1.bf16.msra.mxu0 %v3330_v40  ;;  %v2336_v40 = vsub.s32 0, %v2335_v38 }
 0x72d   : > { %3118 = vmatprep.subr.bf16.mxu0 %v3579_v43 }
 0x72f   : > { %2903 = vmatmul.mubr.msk.bf16.vlgmr.msra.gmra.mxu0 %vm683_vm4, %v1736_v44 }
 0x730   : > { %3122 = vmatprep.mubr.msk.bf16.mxu0 %vm3580_vm8, %v3579_v43  ;;  %3119 = vmatpush3.bf16.msra.mxu0 %v3347_v33 }
 0x731   : > { %3120 = vmatprep.subr.bf16.mxu0 %v3579_v43 }
 0x734   : > { %3121 = vmatpush3.bf16.msra.mxu0 %v3348_v34 }
 0x7d7   : > { %v1931_v50 = vpop.f32.mrf.mxu0 }
 0x7d9   : > { %v1933_v51 = vpop.f32.mrf.mxu0 }
 0x7db   : > { %v1935_v54 = vpop.f32.mrf.mxu0 }
 0x7dc   : > { %v2337_v54 = vrot.slane %v2332_v46, %v2336_v40 }
 0x7dd   : > { %v1936_v56 = vpop.f32.mrf.mxu0 }
 0x7df   : > { %v2057_v60 = vpop.f32.mrf.mxu0 }
 0x7e0   : > { %v2058_v8 = vadd.f32 %v2057_v60, %v2007_v57 }
 0x7e1   : > { %v3108_v0 = vpop.f32.mrf.mxu0 }
 0x7e2   : > { %v2063_v1 = vmax.f32 %v2058_v8, 0.0 }
 0x7e3   : > { %v2060_v2 = vpop.f32.mrf.mxu0 }
 0x7e4   : > { %v2064_v5 = vpack.c.bf16 %v2063_v1, %v2063_v1 }
 0x7e5   : > { %v3109_v9 = vpop.f32.mrf.mxu0 }
 0x7e6   : > { %2888 = vmatmul.mubr.msk.bf16.vlgmr.msra.gmra.mxu1 %vm683_vm4, %v2064_v5 }
 0x7e7   : > { %2234 = vmatpush1.bf16.msra.mxu1 %v3339_v3  ;;  %v2191_v10 = vpop.f32.mrf.mxu0  ;;  %2253 = vmatprep.mubr.bf16.mxu1 %v3578_v41 }
 0x7e8   : > { %2235 = vmatprep.subr.bf16.mxu1 %v3344_v6  ;;  %v2192_v44 = vadd.f32 %v2191_v10, %v3995_v13 }
 0x7e9   : > { %v2193_v59 = vpop.f32.mrf.mxu0 }
 0x7eb   : > { %2236 = vmatpush1.bf16.msra.mxu1 %v3342_v11  ;;  %v2195_v18 = vpop.f32.mrf.mxu0 }
 0x7ec   : > { %3110 = vmatprep.subr.bf16.mxu1 %v3579_v43  ;;  %v2908_v18 = vld [vmem:[%s4158_s12] ss:$0 sm:$0xff] }
 0x7ed   : > { %v2196_v23 = vpop.f32.mrf.mxu0 }
 0x7ee   : > { %2898 = vmatmul.mubr.msk.bf16.vlgmr.msra.gmra.mxu1 %vm683_vm4, %v1408_v19 }
 0x7ef   : > { %3111 = vmatpush3.bf16.msra.mxu1 %v3345_v17  ;;  %v2319_v41 = vpop.f32.mrf.mxu0  ;;  %3114 = vmatprep.mubr.msk.bf16.mxu1 %vm3580_vm8, %v3579_v43 }
 0x7f0   : > { %v2320_v25 = vadd.f32 %v2319_v41, %v1931_v50  ;;  %3112 = vmatprep.subr.bf16.mxu1 %v3579_v43  ;;  %v2194_v50 = vadd.f32 %v2193_v59, %v3997_v14  ;;  %v3350_v59 = vld [vmem:[%s4159_s13] sm:$0xff]  }
 0x7f1   : > { %v2321_v27 = vpop.f32.mrf.mxu0 }
 0x7f2   : > { %v2322_v28 = vadd.f32 %v2321_v27, %v1933_v51 }
 0x7f3   : > { %3113 = vmatpush3.bf16.msra.mxu1 %v3346_v24  ;;  %v2323_v29 = vpop.f32.mrf.mxu0 }
 0x7f4   : > { %3126 = vmatprep.subr.bf16.mxu1 %v3579_v43 }
 0x7f5   : > { %v2324_v30 = vpop.f32.mrf.mxu0 }
 0x7f6   : > { %3115 = vmatmul.mubr.msk.bf16.vlgmr.msra.gmra.mxu1 %vm683_vm4, %v2394_v32 }
 0x7f7   : > { %3130 = vmatprep.mubr.msk.bf16.mxu1 %vm3580_vm8, %v3579_v43  ;;  %3127 = vmatpush3.bf16.msra.mxu1 %v3349_v16 }
 0x7f8   : > { %3128 = vmatprep.subr.bf16.mxu1 %v3579_v43 }
 0x7fb   : > { %3129 = vmatpush3.bf16.msra.mxu1 %v3350_v59 }
 0x8a6   : > { %v2127_v35 = vpop.f32.mrf.mxu1 }
 0x8a7   : > { %v2328_v51 = vadd.f32 %v2320_v25, %v2127_v35 }
 0x8a8   : > { %v2129_v62 = vpop.f32.mrf.mxu1 }
 0x8a9   : > { %v2329_v57 = vadd.f32 %v2322_v28, %v2129_v62 }
 0x8aa   : > { %v2131_v37 = vpop.f32.mrf.mxu1 }
 0x8ac   : > { %v2132_v39 = vpop.f32.mrf.mxu1 }
 0x8ae   : > { %v2255_v31 = vpop.f32.mrf.mxu1 }
 0x8af   : > { %v2256_v45 = vadd.f32 %v2255_v31, %v4025_v15  ;;  %v2351_v15 = vunpack.c.0.s8 %v2350_v48 }
 0x8b0   : > { %v2257_v49 = vpop.f32.mrf.mxu1 }
 0x8b1   : > { %v2326_v52 = vadd.f32 %v2256_v45, %v2192_v44  ;;  %v2258_v53 = vadd.f32 %v2257_v49, %v4027_v61  ;;  %v2354_v2 = vsub.s32 %v2351_v15, %v2335_v38 }
 0x8b2   : > { %v2259_v56 = vpop.f32.mrf.mxu1 }
 0x8b3   : > { %v2330_v13 = vadd.f32 %v2328_v51, %v2326_v52  ;;  %v2327_v60 = vadd.f32 %v2258_v53, %v2194_v50 }
 0x8b4   : > { %v2260_v8 = vpop.f32.mrf.mxu1 }
 0x8b5   : > { %v2331_v63 = vadd.f32 %v2329_v57, %v2327_v60  ;;  %v2344_v14 = vadd.f32 %v2337_v54, %v2330_v13 }
 0x8b6   : > { %v2444_v0 = vpop.f32.mrf.mxu1 }
 0x8b7   : > { %v2345_v1 = vadd.f32 %v2341_v55, %v2331_v63  ;;  %v2445_v4 = vadd.f32 %v2904_v58, %v2444_v0 }
 0x8b8   : > { %v3116_v3 = vpop.f32.mrf.mxu1 }
 0x8b9   : > { %v2348_v61 = vcombine.low %v2344_v14, %v2345_v1  ;;  %v2451_v11 = vmax.f32 %v2445_v4, 0.0 }
 0x8ba   : > { %v2447_v5 = vpop.f32.mrf.mxu1 }
 0x8bb   : > { %v2355_v6 = vrot.slane %v2348_v61, %v2354_v2  ;;  %v2448_v7 = vadd.f32 %v2904_v58, %v2447_v5 }
 0x8bc   : > { %v3117_v9 = vpop.f32.mrf.mxu1 }
 0x8bd   : > { %v2362_v10 = vrot.slane %v2355_v6, %v2354_v2  ;;  %v2452_v12 = vmax.f32 %v2448_v7, 0.0 }
 0x8bf   : > { %2368 = vst.msk [vmem:[%s609_s7] sm:$0x3] %vm2366_vm10, %v2362_v10  ;;  %v2453_v21 = vpack.c.bf16 %v2452_v12, %v2451_v11 }
 0x8c1   : > { %3123 = vmatmul.mubr.msk.bf16.vlgmr.msra.gmra.mxu0 %vm683_vm4, %v2453_v21 }
 0x981   : > { %v2514_v17 = vpop.f32.mrf.mxu0 }
 0x982   : > { %v2515_v20 = vadd.f32 %v2908_v18, %v2514_v17 }
 0x983   : > { %v3124_v19 = vpop.f32.mrf.mxu0 }
 0x984   : > { %v2521_v24 = vmax.f32 %v2515_v20, 0.0 }
 0x985   : > { %v2517_v22 = vpop.f32.mrf.mxu0 }
 0x986   : > { %v2518_v23 = vadd.f32 %v2908_v18, %v2517_v22 }
 0x987   : > { %v3125_v41 = vpop.f32.mrf.mxu0 }
 0x988   : > { %v2522_v25 = vmax.f32 %v2518_v23, 0.0 }
 0x98a   : > { %v2523_v43 = vpack.c.bf16 %v2522_v25, %v2521_v24 }
 0x98c   : > { %3131 = vmatmul.mubr.msk.bf16.vlgmr.msra.gmra.mxu1 %vm683_vm4, %v2523_v43 }
 0xa4c   : > { %v2584_v27 = vpop.f32.mrf.mxu1 }
 0xa4d   : > { %v2585_v28 = vadd.f32 %v2912_v26, %v2584_v27 }
 0xa4e   : > { %v3132_v29 = vpop.f32.mrf.mxu1 }
 0xa4f   : > { %2592 = vst.msk [vmem:[%s3820_s6] sm:$0xff] %vm2591_vm11, %v2585_v28 }
 0xa50   : > { %v2587_v30 = vpop.f32.mrf.mxu1 }
 0xa51   : > { %v2588_v32 = vadd.f32 %v2912_v26, %v2587_v30 }
 0xa52   : > { %v3133_v33 = vpop.f32.mrf.mxu1 }
 0xa53   : > { %2594 = vst.msk [vmem:[%s3820_s6 + $0x8] sm:$0x7] %vm2593_vm12, %v2588_v32 }
 0xa54 PF: > { %s4211_s18 = sld [smem:[#allocation24_spill]]  ;;  %s2922_s20 = sshll.u32 %s3553_s25, 5 }
 0xa55   : > { %s4212_s4 = sld [smem:[#allocation34_spill]]  ;;  %s2615_s28 = sshll.u32 %s609_s7, 4  ;;  %s2616_s28 = int_to_ptr.vmem [resolvable:$true] %s2615_s28 }
 0xa56   : > { %s4213_s23 = sand.u32 1, %s3541_s22   ;;  %s3461_s26 = scalar_lea.vmem %s2616_s28, 32 }
 0xa57   : > { %s2596_s27 = scalar_lea.sflag [#allocation7], %s4213_s23  ;;  %p3462_p2 = scmp.ne.s32.totalorder %s2616_s28, %s3461_s26 }
 0xa58   : > { %s3582_s6 = smov [#allocation13]  }
 0xa59   : > { %s3465_s0 = sshll.u32 %s3582_s6, 4  ;;  %s3466_s0 = int_to_ptr.vmem [resolvable:$false] %s3465_s0 }
 0xa5a   : > { %p4214_p4 = scmp.ne.s32.totalorder %s4211_s18, 0  ;;  %s3467_s30 = scalar_lea.vmem %s3466_s0, 64 }
 0xa5b   : > { %s2613_s5 = scalar_lea.hbm %s4212_s4, %s2922_s20  ;;  %p3468_p6 = scmp.lt.s32.totalorder %s2616_s28, %s3466_s0 }
 0xa5c   : > { %p3463_p9 = pnand %p3462_p2, %p4214_p4  ;;  %p3469_p7 = scmp.lt.s32.totalorder %s3467_s30, %s3461_s26 }
 0xa5e   : > { %p3464_p5 = pneg %p3463_p9  ;;  %p3470_p3 = por %p3469_p7, %p3468_p6 }
 0xa60   : > { %p3471_p10 = pnand %p3470_p3, %p3464_p5 }
 0xa62   : > { %3474 = shalt.err (!%p3471_p10)
}
 0xa63   : > { %s3475_s25 = scalar_lea.hbm %s2613_s5, 32  ;;  %s3479_s21 = scalar_lea.hbm %s4212_s4, 64 }
 0xa64   : > { %p3476_p13 = scmp.ne.s32.totalorder %s2613_s5, %s3475_s25  ;;  %p3480_p1 = scmp.lt.s32.totalorder %s2613_s5, %s4212_s4 }
 0xa65   : > { %p3481_p11 = scmp.lt.s32.totalorder %s3479_s21, %s3475_s25 }
 0xa66   : > { %p3477_p8 = pnand %p3476_p13, %p4214_p4 }
 0xa67   : > { %p3482_p12 = por %p3481_p11, %p3480_p1 }
 0xa68   : > { %p3478_p0 = pneg %p3477_p8 }
 0xa6a   : > { %p3483_p2 = pnand %p3482_p12, %p3478_p0 }
 0xa6c   : > { %3486 = shalt.err (!%p3483_p2)
}
 0xa6d   : > { %3152 = dma.vmem_to_hbm [thread:$0]  (%p4214_p4), %s2616_s28, 32, %s2613_s5, %s2596_s27  }
 0xa6e PF: > { %s4215_s20 = sld [smem:[#allocation22_spill]] }
 0xa6f   : > { %s4216_s15 = sld [smem:[#allocation18_spill]] }
 0xa70   : > { %s4217_s19 = sld [smem:[#allocation26_spill]] }
 0xa74   : > { %p3179_p9 = scmp.ge.s32.totalorder %s4215_s20, 2 }
 0xa75   : > { %s2630_s23 = sand.u32 1, %s4216_s15  }
 0xa76   : > { %p4218_p5 = scmp.ne.s32.totalorder %s4217_s19, 0  ;;  %s2631_s26 = scalar_lea.sflag [#allocation7], %s2630_s23 }
 0xa78   : > { %p3168_p6 = pnand %p3179_p9, %p4218_p5 }
 0xa7a   : > { %p3169_p7 = pneg %p3168_p6 }
 0xa7c   : > { %3532 = dma.done.wait (%p3169_p7), %s2631_s26, 32  }
 0xa7d   : > { %3534 = vsyncadd (%p3169_p7), %s2631_s26, 4294967264  ;;  %s33_s28 = sadd.s32 1, %s4215_s20   ;;  %s4219_s6 = sld [smem:[#allocation19_spill]] }
 0xa7e   : > { %p30_p3 = scmp.ge.s32.totalorder %s33_s28, 6   ;;  %s4220_s23 = sld [smem:[#allocation27_spill]] }
 0xa7f   : > { %s4221_s24 = sld [smem:[#allocation20_spill]]  ;;  %s4225_s21 = smov %s3541_s22 }
 0xa80   : > { %s4222_s25 = sld [smem:[#allocation21_spill]]  ;;  %32 = sbr.rel (!%p30_p3) target bundleno = 16 (0x10), region = 173 }
 0xa81   : > { %s4223_s26 = sld [smem:[#allocation23_spill]] }
 0xa82   : > { %s4224_s27 = sld [smem:[#allocation25_spill]] }
 0xa83   : > { %s4226_s22 = smov %s4219_s6 }
 0xa85   :  { %2644 = vsyncpa [#allocation6], 1 }
 0xa86   :  { %2646 = vsyncpa [#allocation6 + $0x1], 1 }
 0xa87   :  { %2647 = vsyncpa [#allocation9], 1 }
 0xa88   :  { %2648 = vsyncpa [#allocation12], 1 }
 0xa89   :  { %2649 = vsyncpa [#allocation7], 1 }
 0xa8a   :  { %2651 = vsyncpa [#allocation7 + $0x1], 1 }

</bundles_post_ra>
